<compile_context>
chip_gen: v7x
topology: tpu7x:2x2x1
jax: 0.10.0
libtpu: 0.0.40
codegen_flags: <defaults>
</compile_context>

<pallas_src>
import math
from functools import partial

import jax
import jax.numpy as jnp
from jax import lax
from jax.experimental import pallas as pl
from jax.experimental.pallas import tpu as pltpu


COMPUTE_DTYPE = jnp.bfloat16          # MXU operand dtype (f32 accumulation)

LAYER_PARAM_ORDER = ('ln1_g', 'ln1_b', 'wqkv', 'bqkv', 'wo', 'bo',
                     'ln2_g', 'ln2_b', 'w1', 'b1', 'w2', 'b2')


# ---------------------------------------------------------------------------
# shared math (used inside the kernel and in the pure-JAX reference)
# ---------------------------------------------------------------------------
def layer_norm(x, gamma, beta, eps=1e-6):
    u = jnp.mean(x, axis=-1, keepdims=True)
    s = jnp.mean((x - u) ** 2, axis=-1, keepdims=True)
    return gamma * ((x - u) * lax.rsqrt(s + eps)) + beta      # rsqrt -> EUP slot


def gelu(x):
    # BERT-style tanh-approximated GeLU (f32)
    return 0.5 * x * (1.0 + jnp.tanh(math.sqrt(2.0 / math.pi) * (x + 0.044715 * x ** 3)))


def sinusoidal_pe(T, H):
    pos = jnp.arange(T, dtype=jnp.float32)[:, None]
    i = jnp.arange(0, H, 2, dtype=jnp.float32)[None, :]
    div = jnp.exp(-math.log(10000.0) * i / H)
    pe = jnp.zeros((T, H), jnp.float32)
    pe = pe.at[:, 0::2].set(jnp.sin(pos * div))
    pe = pe.at[:, 1::2].set(jnp.cos(pos * div))
    return pe[None]  # [1, T, H]


# ---------------------------------------------------------------------------
# Pallas kernel: one (batch element, layer) per grid step; activation carried
# in VMEM scratch across the layer axis; final LN + length log-probs fused in.
# ---------------------------------------------------------------------------
def encoder_kernel(num_heads, compute_dtype,
                   x_ref, bias_ref,
                   ln1_g, ln1_b, wqkv, bqkv, wo, bo,
                   ln2_g, ln2_b, w1, b1, w2, b2,
                   lnf_g, lnf_b, wlen,
                   out_ref, lp_ref,
                   x_scr, ctx_scr):
    l = pl.program_id(1)
    num_l = pl.num_programs(1)
    cdt = compute_dtype

    @pl.when(l == 0)
    def _():
        x_scr[...] = x_ref[0]                     # load this batch element's activations

    x = x_scr[...]                                # [S, H] f32 carried across layers
    S, H = x.shape
    dh = H // num_heads
    scale = 1.0 / math.sqrt(dh)
    key_bias = bias_ref[0]                        # [1, S] additive: 0 valid / -1e30 pad

    # ---- multi-head self-attention (pre-LN) ----
    xn = layer_norm(x, ln1_g[0, 0], ln1_b[0, 0])
    # ONE lane-dense [S,H]x[H,3H] projection (fills the MXU); columns ordered
    # (q|k|v, head-major features) so per-head slices below are contiguous.
    qkv = jnp.dot(xn.astype(cdt), wqkv[0],
                  preferred_element_type=jnp.float32) + bqkv[0, 0]      # [S, 3H] f32
    # Per-head attention on static lane slices (dh-wide contractions are the
    # same MXU work as a head-batched einsum, without rank-3 relayouts).
    # Softmax stays f32; heads are merged lane-dense into ctx_scr.
    for n in range(num_heads):
        q_n = qkv[:, n * dh:(n + 1) * dh] * scale                       # [S, dh]
        k_n = qkv[:, H + n * dh:H + (n + 1) * dh]
        v_n = qkv[:, 2 * H + n * dh:2 * H + (n + 1) * dh]
        s_n = lax.dot_general(q_n.astype(cdt), k_n.astype(cdt),
                              (((1,), (1,)), ((), ())),
                              preferred_element_type=jnp.float32) + key_bias   # [S, S]
        m_n = jnp.max(s_n, axis=-1, keepdims=True)
        p_n = jnp.exp(s_n - m_n)
        inv = pl.reciprocal(jnp.sum(p_n, axis=-1, keepdims=True))       # exact (EUP)
        ctx_n = jnp.dot(p_n.astype(cdt), v_n.astype(cdt),
                        preferred_element_type=jnp.float32) * inv       # [S, dh]
        ctx_scr[:, n * dh:(n + 1) * dh] = ctx_n
    # single [S,H]x[H,H] output projection on the merged context
    attn_out = jnp.dot(ctx_scr[...].astype(cdt), wo[0],
                       preferred_element_type=jnp.float32) + bo[0, 0]
    h = attn_out + x                               # dropout == identity (eval)

    # ---- position-wise feed-forward (pre-LN) ----
    hn = layer_norm(h, ln2_g[0, 0], ln2_b[0, 0])
    f = gelu(jnp.dot(hn.astype(cdt), w1[0],
                     preferred_element_type=jnp.float32) + b1[0, 0])
    f = jnp.dot(f.astype(cdt), w2[0],
                preferred_element_type=jnp.float32) + b2[0, 0]
    x_new = f + h
    x_scr[...] = x_new

    # ---- last layer: final LayerNorm + length-logit log_softmax epilogue ----
    @pl.when(l == num_l - 1)
    def _():
        xn_f = layer_norm(x_new, lnf_g[0], lnf_b[0])
        out_ref[0] = xn_f
        logits = jnp.dot(xn_f[0:1, :].astype(cdt), wlen[...],
                         preferred_element_type=jnp.float32)            # [1, Vlen]
        col = lax.broadcasted_iota(jnp.int32, logits.shape, 1)
        logits = jnp.where(col == 0, -jnp.inf, logits)                  # logits[:,0] += -inf
        mx = jnp.max(logits, axis=-1, keepdims=True)
        lse = jnp.log(jnp.sum(jnp.exp(logits - mx), axis=-1, keepdims=True)) + mx
        lp_ref[0] = logits - lse


# ---------------------------------------------------------------------------
# wrappers
# ---------------------------------------------------------------------------
def _stack_layer_params(layers, compute_dtype=COMPUTE_DTYPE):
    """Stack per-layer params to [NL, ...]; fuse QKV; cast matmul weights to bf16."""
    NL = len(layers)
    H = layers[0]['wq'].shape[0]

    def stack(name):
        return jnp.stack([lp[name] for lp in layers], axis=0)

    def vec(name):                                  # [NL, X] -> [NL, 1, X]
        return stack(name)[:, None, :]

    # fused QKV weight, columns ordered (q|k|v, head-major output features)
    wqkv = jnp.stack([stack('wq'), stack('wk'), stack('wv')], axis=2)   # [NL, H, 3, H]
    wqkv = wqkv.reshape(NL, H, 3 * H).astype(compute_dtype)
    bqkv = jnp.stack([stack('bq'), stack('bk'), stack('bv')], axis=1)   # [NL, 3, H]
    bqkv = bqkv.reshape(NL, 1, 3 * H)

    return {
        'ln1_g': vec('ln1_g'), 'ln1_b': vec('ln1_b'),
        'wqkv': wqkv, 'bqkv': bqkv,
        'wo': stack('wo').astype(compute_dtype), 'bo': vec('bo'),
        'ln2_g': vec('ln2_g'), 'ln2_b': vec('ln2_b'),
        'w1': stack('w1').astype(compute_dtype), 'b1': vec('b1'),
        'w2': stack('w2').astype(compute_dtype), 'b2': vec('b2'),
    }


def _layer_spec(a):
    """Block one layer's slice: block (1, ...), index (l, 0, ...)."""
    rest = a.ndim - 1
    return pl.BlockSpec((1,) + a.shape[1:],
                        lambda b, l, _r=rest: (l,) + (0,) * _r)


def _const_spec(a):
    nd = a.ndim
    return pl.BlockSpec(a.shape, lambda b, l, _nd=nd: (0,) * _nd)


def run_fused_encoder(x, mask_bias, stacked, lnf_g, lnf_b, wlen,
                      num_layers, num_heads):
    B, S, H = x.shape
    Vlen = wlen.shape[1]
    layer_args = [stacked[k] for k in LAYER_PARAM_ORDER]

    in_specs = ([pl.BlockSpec((1, S, H), lambda b, l: (b, 0, 0)),
                 pl.BlockSpec((1, 1, S), lambda b, l: (b, 0, 0))]
                + [_layer_spec(a) for a in layer_args]
                + [_const_spec(lnf_g), _const_spec(lnf_b), _const_spec(wlen)])

    xn, lp = pl.pallas_call(
        partial(encoder_kernel, num_heads, COMPUTE_DTYPE),
        out_shape=(jax.ShapeDtypeStruct((B, S, H), jnp.float32),
                   jax.ShapeDtypeStruct((B, 1, Vlen), jnp.float32)),
        grid=(B, num_layers),
        in_specs=in_specs,
        out_specs=(pl.BlockSpec((1, S, H), lambda b, l: (b, 0, 0)),
                   pl.BlockSpec((1, 1, Vlen), lambda b, l: (b, 0, 0))),
        scratch_shapes=[pltpu.VMEM((S, H), jnp.float32),     # activation carry
                        pltpu.VMEM((S, H), jnp.float32)],    # merged per-head context
        compiler_params=pltpu.CompilerParams(
            dimension_semantics=("parallel", "arbitrary")),   # batch across cores,
                                                              # layers sequential
    )(x, mask_bias, *layer_args, lnf_g, lnf_b, wlen)
    return xn, lp[:, 0, :]


@partial(jax.jit, static_argnums=(3,))
def transformer_encoder_forward(x_feats, mask, params, num_heads):
    """word_tokens.ndim == 3 path of TransformerEncoder.forward."""
    B, T, H = x_feats.shape
    x = x_feats + sinusoidal_pe(T, H)                     # x + abs_pe(word_tokens)
    # emb_dropout: identity (eval)
    len_tok = jnp.broadcast_to(params['embed_lengths'][0], (B, 1, H))
    x = jnp.concatenate([len_tok, x], axis=1)             # [B, S, H], S = T + 1
    mask_full = jnp.concatenate([jnp.ones((B, 1), jnp.float32), mask], axis=1)

    S = T + 1
    Sp = ((S + 7) // 8) * 8                               # sublane-aligned sequence
    pad = Sp - S
    x_p = jnp.pad(x, ((0, 0), (0, pad), (0, 0))) if pad else x
    mask_p = (jnp.concatenate([mask_full, jnp.zeros((B, pad), jnp.float32)], axis=1)
              if pad else mask_full)
    mask_bias = jnp.where(mask_p > 0.5, 0.0, -1e30).astype(jnp.float32)[:, None, :]

    stacked = _stack_layer_params(params['layers'])
    xn, lprobs = run_fused_encoder(
        x_p, mask_bias, stacked,
        params['ln_g'][None, :], params['ln_b'][None, :],
        params['embed_lengths'].T.astype(COMPUTE_DTYPE),
        len(params['layers']), num_heads)

    enc_output = xn[:, 1:S, :]
    src_mask = mask_full[:, 1:]
    return enc_output, lprobs, src_mask


# ---------------------------------------------------------------------------
# deterministic parameter init (random biases/affines so the test is meaningful)
# ---------------------------------------------------------------------------
def init_params(key, H, F, num_layers, Vlen):
    keys = iter(jax.random.split(key, num_layers * 16 + 8))

    def nrm(shape, std=0.02):
        return std * jax.random.normal(next(keys), shape, jnp.float32)

    layers = []
    for _ in range(num_layers):
        layers.append({
            'ln1_g': 1.0 + nrm((H,), 0.05), 'ln1_b': nrm((H,), 0.05),
            'wq': nrm((H, H)), 'bq': nrm((H,)),
            'wk': nrm((H, H)), 'bk': nrm((H,)),
            'wv': nrm((H, H)), 'bv': nrm((H,)),
            'wo': nrm((H, H)), 'bo': nrm((H,)),
            'ln2_g': 1.0 + nrm((H,), 0.05), 'ln2_b': nrm((H,), 0.05),
            'w1': nrm((H, F)), 'b1': nrm((F,)),
            'w2': nrm((F, H)), 'b2': nrm((H,)),
        })
    return {
        'layers': layers,
        'ln_g': 1.0 + nrm((H,), 0.05),
        'ln_b': nrm((H,), 0.05),
        'embed_lengths': nrm((Vlen, H)),
    }


# ---------------------------------------------------------------------------
# pure-JAX f32 reference (same math, batched)
# ---------------------------------------------------------------------------
def ref_layer(x, mask_full, p, num_heads):
    B, S, H = x.shape
    dh = H // num_heads
    xn = layer_norm(x, p['ln1_g'], p['ln1_b'])
    q = xn @ p['wq'] + p['bq']
    k = xn @ p['wk'] + p['bk']
    v = xn @ p['wv'] + p['bv']

    def split(t):
        return t.reshape(B, S, num_heads, dh).transpose(0, 2, 1, 3)

    qh, kh, vh = split(q) / math.sqrt(dh), split(k), split(v)
    scores = jnp.einsum('bhqd,bhkd->bhqk', qh, kh)
    scores = jnp.where(mask_full[:, None, None, :] > 0.5, scores, -1e30)
    attn = jax.nn.softmax(scores, axis=-1)
    ctx = jnp.einsum('bhqk,bhkd->bhqd', attn, vh).transpose(0, 2, 1, 3).reshape(B, S, H)
    attn_out = ctx @ p['wo'] + p['bo']
    h = attn_out + x
    hn = layer_norm(h, p['ln2_g'], p['ln2_b'])
    f = gelu(hn @ p['w1'] + p['b1']) @ p['w2'] + p['b2']
    return f + h


def reference_forward(x_feats, mask, params, num_heads):
    B, T, H = x_feats.shape
    x = x_feats + sinusoidal_pe(T, H)
    len_tok = jnp.broadcast_to(params['embed_lengths'][0], (B, 1, H))
    x = jnp.concatenate([len_tok, x], axis=1)
    mask_full = jnp.concatenate([jnp.ones((B, 1), jnp.float32), mask], axis=1)
    for p in params['layers']:
        x = ref_layer(x, mask_full, p, num_heads)
    xn = layer_norm(x, params['ln_g'], params['ln_b'])
    logits = xn[:, 0, :] @ params['embed_lengths'].T
    logits = logits.at[:, 0].add(-jnp.inf)
    lprobs = jax.nn.log_softmax(logits, axis=-1)
    return xn[:, 1:, :], lprobs, mask_full[:, 1:]


# ---------------------------------------------------------------------------
if __name__ == "__main__":
    B, T, H, F, NH, NL = 2, 8, 32, 64, 4, 2
    MAX_TARGET_POSITIONS = 16                    # embed_lengths has MAX+1 rows
    key = jax.random.PRNGKey(0)
    k_x, k_p = jax.random.split(key, 2)

    # word_tokens given as 3-D features [B, T, H]  (ndim == 3 branch)
    word_feats = jax.random.normal(k_x, (B, T, H), jnp.float32)
    mask = jnp.ones((B, T), jnp.float32).at[1, 6:].set(0.0)   # some padding
    params = init_params(k_p, H, F, NL, MAX_TARGET_POSITIONS + 1)

    enc_out, lprobs, src_mask = transformer_encoder_forward(word_feats, mask, params, NH)
    jax.block_until_ready((enc_out, lprobs, src_mask))

    ref_enc, ref_lp, ref_mask = reference_forward(word_feats, mask, params, NH)
    assert enc_out.shape == (B, T, H)
    assert lprobs.shape == (B, MAX_TARGET_POSITIONS + 1)
    # tolerance accommodates bf16 matmul operands (f32 accumulation) in the kernel
    assert jnp.allclose(enc_out, ref_enc, atol=1e-2, rtol=1e-2)
    assert jnp.allclose(lprobs[:, 1:], ref_lp[:, 1:], atol=1e-2, rtol=1e-2)
    assert bool(jnp.all(jnp.isneginf(lprobs[:, 0])))
    assert jnp.array_equal(src_mask, ref_mask)

    print("KERNEL_OK")
</pallas_src>

<mosaic_0001>
module attributes {stable_mosaic.version = 11 : i64} {
  func.func @encoder_kernel(%arg0: i32, %arg1: i32, %arg2: memref<1x16x32xf32, #tpu.memory_space<vmem>>, %arg3: memref<1x1x16xf32, #tpu.memory_space<vmem>>, %arg4: memref<1x1x32xf32, #tpu.memory_space<vmem>>, %arg5: memref<1x1x32xf32, #tpu.memory_space<vmem>>, %arg6: memref<1x32x96xbf16, #tpu.memory_space<vmem>>, %arg7: memref<1x1x96xf32, #tpu.memory_space<vmem>>, %arg8: memref<1x32x32xbf16, #tpu.memory_space<vmem>>, %arg9: memref<1x1x32xf32, #tpu.memory_space<vmem>>, %arg10: memref<1x1x32xf32, #tpu.memory_space<vmem>>, %arg11: memref<1x1x32xf32, #tpu.memory_space<vmem>>, %arg12: memref<1x32x64xbf16, #tpu.memory_space<vmem>>, %arg13: memref<1x1x64xf32, #tpu.memory_space<vmem>>, %arg14: memref<1x64x32xbf16, #tpu.memory_space<vmem>>, %arg15: memref<1x1x32xf32, #tpu.memory_space<vmem>>, %arg16: memref<1x32xf32, #tpu.memory_space<vmem>>, %arg17: memref<1x32xf32, #tpu.memory_space<vmem>>, %arg18: memref<32x17xbf16, #tpu.memory_space<vmem>>, %arg19: memref<1x16x32xf32, #tpu.memory_space<vmem>>, %arg20: memref<1x1x17xf32, #tpu.memory_space<vmem>>, %arg21: memref<16x32xf32, #tpu.memory_space<vmem>>, %arg22: memref<16x32xf32, #tpu.memory_space<vmem>>) attributes {dimension_semantics = [#tpu.dimension_semantics<parallel>, #tpu.dimension_semantics<arbitrary>], iteration_bounds = array<i64: 2, 2>, scalar_prefetch = 0 : i64, scratch_operands = 2 : i64, tpu.core_type = #tpu.core_type<tc>, window_params = [{transform_indices = @transform_0, window_bounds = array<i64: 1, 16, 32>}, {transform_indices = @transform_1, window_bounds = array<i64: 1, 1, 16>}, {transform_indices = @transform_2, window_bounds = array<i64: 1, 1, 32>}, {transform_indices = @transform_3, window_bounds = array<i64: 1, 1, 32>}, {transform_indices = @transform_4, window_bounds = array<i64: 1, 32, 96>}, {transform_indices = @transform_5, window_bounds = array<i64: 1, 1, 96>}, {transform_indices = @transform_6, window_bounds = array<i64: 1, 32, 32>}, {transform_indices = @transform_7, window_bounds = array<i64: 1, 1, 32>}, {transform_indices = @transform_8, window_bounds = array<i64: 1, 1, 32>}, {transform_indices = @transform_9, window_bounds = array<i64: 1, 1, 32>}, {transform_indices = @transform_10, window_bounds = array<i64: 1, 32, 64>}, {transform_indices = @transform_11, window_bounds = array<i64: 1, 1, 64>}, {transform_indices = @transform_12, window_bounds = array<i64: 1, 64, 32>}, {transform_indices = @transform_13, window_bounds = array<i64: 1, 1, 32>}, {pipeline_mode = #tpu.pipeline_mode<synchronous>, transform_indices = @transform_14, window_bounds = array<i64: 1, 32>}, {pipeline_mode = #tpu.pipeline_mode<synchronous>, transform_indices = @transform_15, window_bounds = array<i64: 1, 32>}, {pipeline_mode = #tpu.pipeline_mode<synchronous>, transform_indices = @transform_16, window_bounds = array<i64: 32, 17>}, {transform_indices = @transform_17, window_bounds = array<i64: 1, 16, 32>}, {transform_indices = @transform_18, window_bounds = array<i64: 1, 1, 17>}]} {
    %c0_i32 = arith.constant 0 : i32
    %0 = arith.cmpi eq, %arg1, %c0_i32 : i32
    %1 = arith.extui %0 : i1 to i32
    %c0_i32_0 = arith.constant 0 : i32
    %2 = arith.cmpi ne, %1, %c0_i32_0 : i32
    scf.if %2 {
      %c0_88 = arith.constant 0 : index
      %c0_89 = arith.constant 0 : index
      %c0_90 = arith.constant 0 : index
      %214 = vector.load %arg2[%c0_88, %c0_89, %c0_90] : memref<1x16x32xf32, #tpu.memory_space<vmem>>, vector<1x16x32xf32>
      %215 = vector.shape_cast %214 : vector<1x16x32xf32> to vector<16x32xf32>
      %c0_91 = arith.constant 0 : index
      %c0_92 = arith.constant 0 : index
      %216 = vector.load %arg21[%c0_91, %c0_92] : memref<16x32xf32, #tpu.memory_space<vmem>>, vector<16x32xf32>
      tpu.vector_store %arg21[%c0_91, %c0_92], %215 {strides = array<i32>} : memref<16x32xf32, #tpu.memory_space<vmem>>, vector<16x32xf32>,
    } else {
    }
    %c0 = arith.constant 0 : index
    %c0_1 = arith.constant 0 : index
    %3 = vector.load %arg21[%c0, %c0_1] : memref<16x32xf32, #tpu.memory_space<vmem>>, vector<16x32xf32>
    %c0_2 = arith.constant 0 : index
    %c0_3 = arith.constant 0 : index
    %c0_4 = arith.constant 0 : index
    %4 = vector.load %arg3[%c0_2, %c0_3, %c0_4] : memref<1x1x16xf32, #tpu.memory_space<vmem>>, vector<1x1x16xf32>
    %5 = vector.shape_cast %4 : vector<1x1x16xf32> to vector<1x16xf32>
    %c0_5 = arith.constant 0 : index
    %c0_6 = arith.constant 0 : index
    %c0_7 = arith.constant 0 : index
    %6 = vector.load %arg4[%c0_5, %c0_6, %c0_7] : memref<1x1x32xf32, #tpu.memory_space<vmem>>, vector<1x1x32xf32>
    %7 = vector.shape_cast %6 : vector<1x1x32xf32> to vector<32xf32>
    %c0_8 = arith.constant 0 : index
    %c0_9 = arith.constant 0 : index
    %c0_10 = arith.constant 0 : index
    %8 = vector.load %arg5[%c0_8, %c0_9, %c0_10] : memref<1x1x32xf32, #tpu.memory_space<vmem>>, vector<1x1x32xf32>
    %9 = vector.shape_cast %8 : vector<1x1x32xf32> to vector<32xf32>
    %cst = arith.constant dense<0.000000e+00> : vector<16xf32>
    %10 = vector.multi_reduction <add>, %3, %cst [1] : vector<16x32xf32> to vector<16xf32>
    %11 = vector.shape_cast %10 : vector<16xf32> to vector<16x1xf32>
    %cst_11 = arith.constant 3.200000e+01 : f32
    %12 = vector.broadcast %cst_11 : f32 to vector<16x1xf32>
    %13 = arith.divf %11, %12 : vector<16x1xf32>
    %14 = vector.broadcast %13 : vector<16x1xf32> to vector<16x32xf32>
    %15 = arith.subf %3, %14 : vector<16x32xf32>
    %16 = arith.mulf %15, %15 : vector<16x32xf32>
    %cst_12 = arith.constant dense<0.000000e+00> : vector<16xf32>
    %17 = vector.multi_reduction <add>, %16, %cst_12 [1] : vector<16x32xf32> to vector<16xf32>
    %18 = vector.shape_cast %17 : vector<16xf32> to vector<16x1xf32>
    %cst_13 = arith.constant 3.200000e+01 : f32
    %19 = vector.broadcast %cst_13 : f32 to vector<16x1xf32>
    %20 = arith.divf %18, %19 : vector<16x1xf32>
    %21 = vector.broadcast %13 : vector<16x1xf32> to vector<16x32xf32>
    %22 = arith.subf %3, %21 : vector<16x32xf32>
    %cst_14 = arith.constant 9.99999997E-7 : f32
    %23 = vector.broadcast %cst_14 : f32 to vector<16x1xf32>
    %24 = arith.addf %20, %23 : vector<16x1xf32>
    %25 = math.rsqrt %24 : vector<16x1xf32>
    %26 = vector.broadcast %25 : vector<16x1xf32> to vector<16x32xf32>
    %27 = arith.mulf %22, %26 : vector<16x32xf32>
    %28 = vector.shape_cast %7 : vector<32xf32> to vector<1x32xf32>
    %29 = vector.broadcast %28 : vector<1x32xf32> to vector<16x32xf32>
    %30 = arith.mulf %29, %27 : vector<16x32xf32>
    %31 = vector.shape_cast %9 : vector<32xf32> to vector<1x32xf32>
    %32 = vector.broadcast %31 : vector<1x32xf32> to vector<16x32xf32>
    %33 = arith.addf %30, %32 : vector<16x32xf32>
    %34 = arith.truncf %33 : vector<16x32xf32> to vector<16x32xbf16>
    %c0_15 = arith.constant 0 : index
    %c0_16 = arith.constant 0 : index
    %c0_17 = arith.constant 0 : index
    %35 = vector.load %arg6[%c0_15, %c0_16, %c0_17] : memref<1x32x96xbf16, #tpu.memory_space<vmem>>, vector<1x32x96xbf16>
    %36 = vector.shape_cast %35 : vector<1x32x96xbf16> to vector<32x96xbf16>
    %cst_18 = arith.constant dense<0.000000e+00> : vector<16x96xf32>
    %37 = tpu.matmul %34, %36, %cst_18 {dimension_numbers = #tpu.dot_dimension_numbers<[1], [0], [0], [1], [0, 0, 1, 1], [], []>} : vector<16x32xbf16>, vector<32x96xbf16>, vector<16x96xf32> -> vector<16x96xf32>
    %c0_19 = arith.constant 0 : index
    %c0_20 = arith.constant 0 : index
    %c0_21 = arith.constant 0 : index
    %38 = vector.load %arg7[%c0_19, %c0_20, %c0_21] : memref<1x1x96xf32, #tpu.memory_space<vmem>>, vector<1x1x96xf32>
    %39 = vector.shape_cast %38 : vector<1x1x96xf32> to vector<96xf32>
    %40 = vector.shape_cast %39 : vector<96xf32> to vector<1x96xf32>
    %41 = vector.broadcast %40 : vector<1x96xf32> to vector<16x96xf32>
    %42 = arith.addf %37, %41 : vector<16x96xf32>
    %43 = vector.extract_strided_slice %42 {offsets = [0, 0], sizes = [16, 8], strides = [1, 1]} : vector<16x96xf32> to vector<16x8xf32>
    %cst_22 = arith.constant 0.353553385 : f32
    %44 = vector.broadcast %cst_22 : f32 to vector<16x8xf32>
    %45 = arith.mulf %43, %44 : vector<16x8xf32>
    %46 = vector.extract_strided_slice %42 {offsets = [0, 32], sizes = [16, 8], strides = [1, 1]} : vector<16x96xf32> to vector<16x8xf32>
    %47 = vector.extract_strided_slice %42 {offsets = [0, 64], sizes = [16, 8], strides = [1, 1]} : vector<16x96xf32> to vector<16x8xf32>
    %48 = arith.truncf %45 : vector<16x8xf32> to vector<16x8xbf16>
    %49 = arith.truncf %46 : vector<16x8xf32> to vector<16x8xbf16>
    %cst_23 = arith.constant dense<0.000000e+00> : vector<16x16xf32>
    %50 = tpu.matmul %48, %49, %cst_23 {dimension_numbers = #tpu.dot_dimension_numbers<[1], [1], [0], [0], [0, 0, 1, 0], [], []>} : vector<16x8xbf16>, vector<16x8xbf16>, vector<16x16xf32> -> vector<16x16xf32>
    %51 = vector.broadcast %5 : vector<1x16xf32> to vector<16x16xf32>
    %52 = arith.addf %50, %51 : vector<16x16xf32>
    %cst_24 = arith.constant dense<0xFF800000> : vector<16xf32>
    %53 = vector.multi_reduction <maximumf>, %52, %cst_24 [1] : vector<16x16xf32> to vector<16xf32>
    %54 = vector.shape_cast %53 : vector<16xf32> to vector<16x1xf32>
    %55 = vector.broadcast %54 : vector<16x1xf32> to vector<16x16xf32>
    %56 = arith.subf %52, %55 : vector<16x16xf32>
    %57 = math.exp %56 : vector<16x16xf32>
    %cst_25 = arith.constant dense<0.000000e+00> : vector<16xf32>
    %58 = vector.multi_reduction <add>, %57, %cst_25 [1] : vector<16x16xf32> to vector<16xf32>
    %59 = vector.shape_cast %58 : vector<16xf32> to vector<16x1xf32>
    %60 = tpu.reciprocal %59 : vector<16x1xf32> -> vector<16x1xf32>
    %61 = arith.truncf %57 : vector<16x16xf32> to vector<16x16xbf16>
    %62 = arith.truncf %47 : vector<16x8xf32> to vector<16x8xbf16>
    %cst_26 = arith.constant dense<0.000000e+00> : vector<16x8xf32>
    %63 = tpu.matmul %61, %62, %cst_26 {dimension_numbers = #tpu.dot_dimension_numbers<[1], [0], [0], [1], [0, 0, 1, 1], [], []>} : vector<16x16xbf16>, vector<16x8xbf16>, vector<16x8xf32> -> vector<16x8xf32>
    %64 = vector.broadcast %60 : vector<16x1xf32> to vector<16x8xf32>
    %65 = arith.mulf %63, %64 : vector<16x8xf32>
    %c0_27 = arith.constant 0 : index
    %c0_28 = arith.constant 0 : index
    %66 = vector.load %arg22[%c0_27, %c0_28] : memref<16x32xf32, #tpu.memory_space<vmem>>, vector<16x8xf32>
    tpu.vector_store %arg22[%c0_27, %c0_28], %65 {strides = array<i32>} : memref<16x32xf32, #tpu.memory_space<vmem>>, vector<16x8xf32>,
    %67 = vector.extract_strided_slice %42 {offsets = [0, 8], sizes = [16, 8], strides = [1, 1]} : vector<16x96xf32> to vector<16x8xf32>
    %cst_29 = arith.constant 0.353553385 : f32
    %68 = vector.broadcast %cst_29 : f32 to vector<16x8xf32>
    %69 = arith.mulf %67, %68 : vector<16x8xf32>
    %70 = vector.extract_strided_slice %42 {offsets = [0, 40], sizes = [16, 8], strides = [1, 1]} : vector<16x96xf32> to vector<16x8xf32>
    %71 = vector.extract_strided_slice %42 {offsets = [0, 72], sizes = [16, 8], strides = [1, 1]} : vector<16x96xf32> to vector<16x8xf32>
    %72 = arith.truncf %69 : vector<16x8xf32> to vector<16x8xbf16>
    %73 = arith.truncf %70 : vector<16x8xf32> to vector<16x8xbf16>
    %cst_30 = arith.constant dense<0.000000e+00> : vector<16x16xf32>
    %74 = tpu.matmul %72, %73, %cst_30 {dimension_numbers = #tpu.dot_dimension_numbers<[1], [1], [0], [0], [0, 0, 1, 0], [], []>} : vector<16x8xbf16>, vector<16x8xbf16>, vector<16x16xf32> -> vector<16x16xf32>
    %75 = vector.broadcast %5 : vector<1x16xf32> to vector<16x16xf32>
    %76 = arith.addf %74, %75 : vector<16x16xf32>
    %cst_31 = arith.constant dense<0xFF800000> : vector<16xf32>
    %77 = vector.multi_reduction <maximumf>, %76, %cst_31 [1] : vector<16x16xf32> to vector<16xf32>
    %78 = vector.shape_cast %77 : vector<16xf32> to vector<16x1xf32>
    %79 = vector.broadcast %78 : vector<16x1xf32> to vector<16x16xf32>
    %80 = arith.subf %76, %79 : vector<16x16xf32>
    %81 = math.exp %80 : vector<16x16xf32>
    %cst_32 = arith.constant dense<0.000000e+00> : vector<16xf32>
    %82 = vector.multi_reduction <add>, %81, %cst_32 [1] : vector<16x16xf32> to vector<16xf32>
    %83 = vector.shape_cast %82 : vector<16xf32> to vector<16x1xf32>
    %84 = tpu.reciprocal %83 : vector<16x1xf32> -> vector<16x1xf32>
    %85 = arith.truncf %81 : vector<16x16xf32> to vector<16x16xbf16>
    %86 = arith.truncf %71 : vector<16x8xf32> to vector<16x8xbf16>
    %cst_33 = arith.constant dense<0.000000e+00> : vector<16x8xf32>
    %87 = tpu.matmul %85, %86, %cst_33 {dimension_numbers = #tpu.dot_dimension_numbers<[1], [0], [0], [1], [0, 0, 1, 1], [], []>} : vector<16x16xbf16>, vector<16x8xbf16>, vector<16x8xf32> -> vector<16x8xf32>
    %88 = vector.broadcast %84 : vector<16x1xf32> to vector<16x8xf32>
    %89 = arith.mulf %87, %88 : vector<16x8xf32>
    %c0_34 = arith.constant 0 : index
    %c8 = arith.constant 8 : index
    %90 = vector.load %arg22[%c0_34, %c8] : memref<16x32xf32, #tpu.memory_space<vmem>>, vector<16x8xf32>
    tpu.vector_store %arg22[%c0_34, %c8], %89 {strides = array<i32>} : memref<16x32xf32, #tpu.memory_space<vmem>>, vector<16x8xf32>,
    %91 = vector.extract_strided_slice %42 {offsets = [0, 16], sizes = [16, 8], strides = [1, 1]} : vector<16x96xf32> to vector<16x8xf32>
    %cst_35 = arith.constant 0.353553385 : f32
    %92 = vector.broadcast %cst_35 : f32 to vector<16x8xf32>
    %93 = arith.mulf %91, %92 : vector<16x8xf32>
    %94 = vector.extract_strided_slice %42 {offsets = [0, 48], sizes = [16, 8], strides = [1, 1]} : vector<16x96xf32> to vector<16x8xf32>
    %95 = vector.extract_strided_slice %42 {offsets = [0, 80], sizes = [16, 8], strides = [1, 1]} : vector<16x96xf32> to vector<16x8xf32>
    %96 = arith.truncf %93 : vector<16x8xf32> to vector<16x8xbf16>
    %97 = arith.truncf %94 : vector<16x8xf32> to vector<16x8xbf16>
    %cst_36 = arith.constant dense<0.000000e+00> : vector<16x16xf32>
    %98 = tpu.matmul %96, %97, %cst_36 {dimension_numbers = #tpu.dot_dimension_numbers<[1], [1], [0], [0], [0, 0, 1, 0], [], []>} : vector<16x8xbf16>, vector<16x8xbf16>, vector<16x16xf32> -> vector<16x16xf32>
    %99 = vector.broadcast %5 : vector<1x16xf32> to vector<16x16xf32>
    %100 = arith.addf %98, %99 : vector<16x16xf32>
    %cst_37 = arith.constant dense<0xFF800000> : vector<16xf32>
    %101 = vector.multi_reduction <maximumf>, %100, %cst_37 [1] : vector<16x16xf32> to vector<16xf32>
    %102 = vector.shape_cast %101 : vector<16xf32> to vector<16x1xf32>
    %103 = vector.broadcast %102 : vector<16x1xf32> to vector<16x16xf32>
    %104 = arith.subf %100, %103 : vector<16x16xf32>
    %105 = math.exp %104 : vector<16x16xf32>
    %cst_38 = arith.constant dense<0.000000e+00> : vector<16xf32>
    %106 = vector.multi_reduction <add>, %105, %cst_38 [1] : vector<16x16xf32> to vector<16xf32>
    %107 = vector.shape_cast %106 : vector<16xf32> to vector<16x1xf32>
    %108 = tpu.reciprocal %107 : vector<16x1xf32> -> vector<16x1xf32>
    %109 = arith.truncf %105 : vector<16x16xf32> to vector<16x16xbf16>
    %110 = arith.truncf %95 : vector<16x8xf32> to vector<16x8xbf16>
    %cst_39 = arith.constant dense<0.000000e+00> : vector<16x8xf32>
    %111 = tpu.matmul %109, %110, %cst_39 {dimension_numbers = #tpu.dot_dimension_numbers<[1], [0], [0], [1], [0, 0, 1, 1], [], []>} : vector<16x16xbf16>, vector<16x8xbf16>, vector<16x8xf32> -> vector<16x8xf32>
    %112 = vector.broadcast %108 : vector<16x1xf32> to vector<16x8xf32>
    %113 = arith.mulf %111, %112 : vector<16x8xf32>
    %c0_40 = arith.constant 0 : index
    %c16 = arith.constant 16 : index
    %114 = vector.load %arg22[%c0_40, %c16] : memref<16x32xf32, #tpu.memory_space<vmem>>, vector<16x8xf32>
    tpu.vector_store %arg22[%c0_40, %c16], %113 {strides = array<i32>} : memref<16x32xf32, #tpu.memory_space<vmem>>, vector<16x8xf32>,
    %115 = vector.extract_strided_slice %42 {offsets = [0, 24], sizes = [16, 8], strides = [1, 1]} : vector<16x96xf32> to vector<16x8xf32>
    %cst_41 = arith.constant 0.353553385 : f32
    %116 = vector.broadcast %cst_41 : f32 to vector<16x8xf32>
    %117 = arith.mulf %115, %116 : vector<16x8xf32>
    %118 = vector.extract_strided_slice %42 {offsets = [0, 56], sizes = [16, 8], strides = [1, 1]} : vector<16x96xf32> to vector<16x8xf32>
    %119 = vector.extract_strided_slice %42 {offsets = [0, 88], sizes = [16, 8], strides = [1, 1]} : vector<16x96xf32> to vector<16x8xf32>
    %120 = arith.truncf %117 : vector<16x8xf32> to vector<16x8xbf16>
    %121 = arith.truncf %118 : vector<16x8xf32> to vector<16x8xbf16>
    %cst_42 = arith.constant dense<0.000000e+00> : vector<16x16xf32>
    %122 = tpu.matmul %120, %121, %cst_42 {dimension_numbers = #tpu.dot_dimension_numbers<[1], [1], [0], [0], [0, 0, 1, 0], [], []>} : vector<16x8xbf16>, vector<16x8xbf16>, vector<16x16xf32> -> vector<16x16xf32>
    %123 = vector.broadcast %5 : vector<1x16xf32> to vector<16x16xf32>
    %124 = arith.addf %122, %123 : vector<16x16xf32>
    %cst_43 = arith.constant dense<0xFF800000> : vector<16xf32>
    %125 = vector.multi_reduction <maximumf>, %124, %cst_43 [1] : vector<16x16xf32> to vector<16xf32>
    %126 = vector.shape_cast %125 : vector<16xf32> to vector<16x1xf32>
    %127 = vector.broadcast %126 : vector<16x1xf32> to vector<16x16xf32>
    %128 = arith.subf %124, %127 : vector<16x16xf32>
    %129 = math.exp %128 : vector<16x16xf32>
    %cst_44 = arith.constant dense<0.000000e+00> : vector<16xf32>
    %130 = vector.multi_reduction <add>, %129, %cst_44 [1] : vector<16x16xf32> to vector<16xf32>
    %131 = vector.shape_cast %130 : vector<16xf32> to vector<16x1xf32>
    %132 = tpu.reciprocal %131 : vector<16x1xf32> -> vector<16x1xf32>
    %133 = arith.truncf %129 : vector<16x16xf32> to vector<16x16xbf16>
    %134 = arith.truncf %119 : vector<16x8xf32> to vector<16x8xbf16>
    %cst_45 = arith.constant dense<0.000000e+00> : vector<16x8xf32>
    %135 = tpu.matmul %133, %134, %cst_45 {dimension_numbers = #tpu.dot_dimension_numbers<[1], [0], [0], [1], [0, 0, 1, 1], [], []>} : vector<16x16xbf16>, vector<16x8xbf16>, vector<16x8xf32> -> vector<16x8xf32>
    %136 = vector.broadcast %132 : vector<16x1xf32> to vector<16x8xf32>
    %137 = arith.mulf %135, %136 : vector<16x8xf32>
    %c0_46 = arith.constant 0 : index
    %c24 = arith.constant 24 : index
    %138 = vector.load %arg22[%c0_46, %c24] : memref<16x32xf32, #tpu.memory_space<vmem>>, vector<16x8xf32>
    tpu.vector_store %arg22[%c0_46, %c24], %137 {strides = array<i32>} : memref<16x32xf32, #tpu.memory_space<vmem>>, vector<16x8xf32>,
    %c0_47 = arith.constant 0 : index
    %c0_48 = arith.constant 0 : index
    %139 = vector.load %arg22[%c0_47, %c0_48] : memref<16x32xf32, #tpu.memory_space<vmem>>, vector<16x32xf32>
    %140 = arith.truncf %139 : vector<16x32xf32> to vector<16x32xbf16>
    %c0_49 = arith.constant 0 : index
    %c0_50 = arith.constant 0 : index
    %c0_51 = arith.constant 0 : index
    %141 = vector.load %arg8[%c0_49, %c0_50, %c0_51] : memref<1x32x32xbf16, #tpu.memory_space<vmem>>, vector<1x32x32xbf16>
    %142 = vector.shape_cast %141 : vector<1x32x32xbf16> to vector<32x32xbf16>
    %cst_52 = arith.constant dense<0.000000e+00> : vector<16x32xf32>
    %143 = tpu.matmul %140, %142, %cst_52 {dimension_numbers = #tpu.dot_dimension_numbers<[1], [0], [0], [1], [0, 0, 1, 1], [], []>} : vector<16x32xbf16>, vector<32x32xbf16>, vector<16x32xf32> -> vector<16x32xf32>
    %c0_53 = arith.constant 0 : index
    %c0_54 = arith.constant 0 : index
    %c0_55 = arith.constant 0 : index
    %144 = vector.load %arg9[%c0_53, %c0_54, %c0_55] : memref<1x1x32xf32, #tpu.memory_space<vmem>>, vector<1x1x32xf32>
    %145 = vector.shape_cast %144 : vector<1x1x32xf32> to vector<32xf32>
    %146 = vector.shape_cast %145 : vector<32xf32> to vector<1x32xf32>
    %147 = vector.broadcast %146 : vector<1x32xf32> to vector<16x32xf32>
    %148 = arith.addf %143, %147 : vector<16x32xf32>
    %149 = arith.addf %148, %3 : vector<16x32xf32>
    %c0_56 = arith.constant 0 : index
    %c0_57 = arith.constant 0 : index
    %c0_58 = arith.constant 0 : index
    %150 = vector.load %arg10[%c0_56, %c0_57, %c0_58] : memref<1x1x32xf32, #tpu.memory_space<vmem>>, vector<1x1x32xf32>
    %151 = vector.shape_cast %150 : vector<1x1x32xf32> to vector<32xf32>
    %c0_59 = arith.constant 0 : index
    %c0_60 = arith.constant 0 : index
    %c0_61 = arith.constant 0 : index
    %152 = vector.load %arg11[%c0_59, %c0_60, %c0_61] : memref<1x1x32xf32, #tpu.memory_space<vmem>>, vector<1x1x32xf32>
    %153 = vector.shape_cast %152 : vector<1x1x32xf32> to vector<32xf32>
    %cst_62 = arith.constant dense<0.000000e+00> : vector<16xf32>
    %154 = vector.multi_reduction <add>, %149, %cst_62 [1] : vector<16x32xf32> to vector<16xf32>
    %155 = vector.shape_cast %154 : vector<16xf32> to vector<16x1xf32>
    %cst_63 = arith.constant 3.200000e+01 : f32
    %156 = vector.broadcast %cst_63 : f32 to vector<16x1xf32>
    %157 = arith.divf %155, %156 : vector<16x1xf32>
    %158 = vector.broadcast %157 : vector<16x1xf32> to vector<16x32xf32>
    %159 = arith.subf %149, %158 : vector<16x32xf32>
    %160 = arith.mulf %159, %159 : vector<16x32xf32>
    %cst_64 = arith.constant dense<0.000000e+00> : vector<16xf32>
    %161 = vector.multi_reduction <add>, %160, %cst_64 [1] : vector<16x32xf32> to vector<16xf32>
    %162 = vector.shape_cast %161 : vector<16xf32> to vector<16x1xf32>
    %cst_65 = arith.constant 3.200000e+01 : f32
    %163 = vector.broadcast %cst_65 : f32 to vector<16x1xf32>
    %164 = arith.divf %162, %163 : vector<16x1xf32>
    %165 = vector.broadcast %157 : vector<16x1xf32> to vector<16x32xf32>
    %166 = arith.subf %149, %165 : vector<16x32xf32>
    %cst_66 = arith.constant 9.99999997E-7 : f32
    %167 = vector.broadcast %cst_66 : f32 to vector<16x1xf32>
    %168 = arith.addf %164, %167 : vector<16x1xf32>
    %169 = math.rsqrt %168 : vector<16x1xf32>
    %170 = vector.broadcast %169 : vector<16x1xf32> to vector<16x32xf32>
    %171 = arith.mulf %166, %170 : vector<16x32xf32>
    %172 = vector.shape_cast %151 : vector<32xf32> to vector<1x32xf32>
    %173 = vector.broadcast %172 : vector<1x32xf32> to vector<16x32xf32>
    %174 = arith.mulf %173, %171 : vector<16x32xf32>
    %175 = vector.shape_cast %153 : vector<32xf32> to vector<1x32xf32>
    %176 = vector.broadcast %175 : vector<1x32xf32> to vector<16x32xf32>
    %177 = arith.addf %174, %176 : vector<16x32xf32>
    %178 = arith.truncf %177 : vector<16x32xf32> to vector<16x32xbf16>
    %c0_67 = arith.constant 0 : index
    %c0_68 = arith.constant 0 : index
    %c0_69 = arith.constant 0 : index
    %179 = vector.load %arg12[%c0_67, %c0_68, %c0_69] : memref<1x32x64xbf16, #tpu.memory_space<vmem>>, vector<1x32x64xbf16>
    %180 = vector.shape_cast %179 : vector<1x32x64xbf16> to vector<32x64xbf16>
    %cst_70 = arith.constant dense<0.000000e+00> : vector<16x64xf32>
    %181 = tpu.matmul %178, %180, %cst_70 {dimension_numbers = #tpu.dot_dimension_numbers<[1], [0], [0], [1], [0, 0, 1, 1], [], []>} : vector<16x32xbf16>, vector<32x64xbf16>, vector<16x64xf32> -> vector<16x64xf32>
    %c0_71 = arith.constant 0 : index
    %c0_72 = arith.constant 0 : index
    %c0_73 = arith.constant 0 : index
    %182 = vector.load %arg13[%c0_71, %c0_72, %c0_73] : memref<1x1x64xf32, #tpu.memory_space<vmem>>, vector<1x1x64xf32>
    %183 = vector.shape_cast %182 : vector<1x1x64xf32> to vector<64xf32>
    %184 = vector.shape_cast %183 : vector<64xf32> to vector<1x64xf32>
    %185 = vector.broadcast %184 : vector<1x64xf32> to vector<16x64xf32>
    %186 = arith.addf %181, %185 : vector<16x64xf32>
    %cst_74 = arith.constant 5.000000e-01 : f32
    %187 = vector.broadcast %cst_74 : f32 to vector<16x64xf32>
    %188 = arith.mulf %187, %186 : vector<16x64xf32>
    %189 = arith.mulf %186, %186 : vector<16x64xf32>
    %190 = arith.mulf %186, %189 : vector<16x64xf32>
    %cst_75 = arith.constant 4.471500e-02 : f32
    %191 = vector.broadcast %cst_75 : f32 to vector<16x64xf32>
    %192 = arith.mulf %191, %190 : vector<16x64xf32>
    %193 = arith.addf %186, %192 : vector<16x64xf32>
    %cst_76 = arith.constant 0.797884583 : f32
    %194 = vector.broadcast %cst_76 : f32 to vector<16x64xf32>
    %195 = arith.mulf %194, %193 : vector<16x64xf32>
    %196 = math.tanh %195 : vector<16x64xf32>
    %cst_77 = arith.constant 1.000000e+00 : f32
    %197 = vector.broadcast %cst_77 : f32 to vector<16x64xf32>
    %198 = arith.addf %197, %196 : vector<16x64xf32>
    %199 = arith.mulf %188, %198 : vector<16x64xf32>
    %200 = arith.truncf %199 : vector<16x64xf32> to vector<16x64xbf16>
    %c0_78 = arith.constant 0 : index
    %c0_79 = arith.constant 0 : index
    %c0_80 = arith.constant 0 : index
    %201 = vector.load %arg14[%c0_78, %c0_79, %c0_80] : memref<1x64x32xbf16, #tpu.memory_space<vmem>>, vector<1x64x32xbf16>
    %202 = vector.shape_cast %201 : vector<1x64x32xbf16> to vector<64x32xbf16>
    %cst_81 = arith.constant dense<0.000000e+00> : vector<16x32xf32>
    %203 = tpu.matmul %200, %202, %cst_81 {dimension_numbers = #tpu.dot_dimension_numbers<[1], [0], [0], [1], [0, 0, 1, 1], [], []>} : vector<16x64xbf16>, vector<64x32xbf16>, vector<16x32xf32> -> vector<16x32xf32>
    %c0_82 = arith.constant 0 : index
    %c0_83 = arith.constant 0 : index
    %c0_84 = arith.constant 0 : index
    %204 = vector.load %arg15[%c0_82, %c0_83, %c0_84] : memref<1x1x32xf32, #tpu.memory_space<vmem>>, vector<1x1x32xf32>
    %205 = vector.shape_cast %204 : vector<1x1x32xf32> to vector<32xf32>
    %206 = vector.shape_cast %205 : vector<32xf32> to vector<1x32xf32>
    %207 = vector.broadcast %206 : vector<1x32xf32> to vector<16x32xf32>
    %208 = arith.addf %203, %207 : vector<16x32xf32>
    %209 = arith.addf %208, %149 : vector<16x32xf32>
    %c0_85 = arith.constant 0 : index
    %c0_86 = arith.constant 0 : index
    %210 = vector.load %arg21[%c0_85, %c0_86] : memref<16x32xf32, #tpu.memory_space<vmem>>, vector<16x32xf32>
    tpu.vector_store %arg21[%c0_85, %c0_86], %209 {strides = array<i32>} : memref<16x32xf32, #tpu.memory_space<vmem>>, vector<16x32xf32>,
    %c1_i32 = arith.constant 1 : i32
    %211 = arith.cmpi eq, %arg1, %c1_i32 : i32
    %212 = arith.extui %211 : i1 to i32
    %c0_i32_87 = arith.constant 0 : i32
    %213 = arith.cmpi ne, %212, %c0_i32_87 : i32
    scf.if %213 {
      %c0_88 = arith.constant 0 : index
      %c0_89 = arith.constant 0 : index
      %214 = vector.load %arg16[%c0_88, %c0_89] : memref<1x32xf32, #tpu.memory_space<vmem>>, vector<1x32xf32>
      %215 = vector.shape_cast %214 : vector<1x32xf32> to vector<32xf32>
      %c0_90 = arith.constant 0 : index
      %c0_91 = arith.constant 0 : index
      %216 = vector.load %arg17[%c0_90, %c0_91] : memref<1x32xf32, #tpu.memory_space<vmem>>, vector<1x32xf32>
      %217 = vector.shape_cast %216 : vector<1x32xf32> to vector<32xf32>
      %cst_92 = arith.constant dense<0.000000e+00> : vector<16xf32>
      %218 = vector.multi_reduction <add>, %209, %cst_92 [1] : vector<16x32xf32> to vector<16xf32>
      %219 = vector.shape_cast %218 : vector<16xf32> to vector<16x1xf32>
      %cst_93 = arith.constant 3.200000e+01 : f32
      %220 = vector.broadcast %cst_93 : f32 to vector<16x1xf32>
      %221 = arith.divf %219, %220 : vector<16x1xf32>
      %222 = vector.broadcast %221 : vector<16x1xf32> to vector<16x32xf32>
      %223 = arith.subf %209, %222 : vector<16x32xf32>
      %224 = arith.mulf %223, %223 : vector<16x32xf32>
      %cst_94 = arith.constant dense<0.000000e+00> : vector<16xf32>
      %225 = vector.multi_reduction <add>, %224, %cst_94 [1] : vector<16x32xf32> to vector<16xf32>
      %226 = vector.shape_cast %225 : vector<16xf32> to vector<16x1xf32>
      %cst_95 = arith.constant 3.200000e+01 : f32
      %227 = vector.broadcast %cst_95 : f32 to vector<16x1xf32>
      %228 = arith.divf %226, %227 : vector<16x1xf32>
      %229 = vector.broadcast %221 : vector<16x1xf32> to vector<16x32xf32>
      %230 = arith.subf %209, %229 : vector<16x32xf32>
      %cst_96 = arith.constant 9.99999997E-7 : f32
      %231 = vector.broadcast %cst_96 : f32 to vector<16x1xf32>
      %232 = arith.addf %228, %231 : vector<16x1xf32>
      %233 = math.rsqrt %232 : vector<16x1xf32>
      %234 = vector.broadcast %233 : vector<16x1xf32> to vector<16x32xf32>
      %235 = arith.mulf %230, %234 : vector<16x32xf32>
      %236 = vector.shape_cast %215 : vector<32xf32> to vector<1x32xf32>
      %237 = vector.broadcast %236 : vector<1x32xf32> to vector<16x32xf32>
      %238 = arith.mulf %237, %235 : vector<16x32xf32>
      %239 = vector.shape_cast %217 : vector<32xf32> to vector<1x32xf32>
      %240 = vector.broadcast %239 : vector<1x32xf32> to vector<16x32xf32>
      %241 = arith.addf %238, %240 : vector<16x32xf32>
      %c0_97 = arith.constant 0 : index
      %c0_98 = arith.constant 0 : index
      %c0_99 = arith.constant 0 : index
      %242 = vector.load %arg19[%c0_97, %c0_98, %c0_99] : memref<1x16x32xf32, #tpu.memory_space<vmem>>, vector<1x16x32xf32>
      %243 = vector.shape_cast %242 : vector<1x16x32xf32> to vector<16x32xf32>
      %244 = vector.shape_cast %241 : vector<16x32xf32> to vector<1x16x32xf32>
      tpu.vector_store %arg19[%c0_97, %c0_98, %c0_99], %244 {strides = array<i32>} : memref<1x16x32xf32, #tpu.memory_space<vmem>>, vector<1x16x32xf32>,
      %245 = vector.extract_strided_slice %241 {offsets = [0, 0], sizes = [1, 32], strides = [1, 1]} : vector<16x32xf32> to vector<1x32xf32>
      %246 = arith.truncf %245 : vector<1x32xf32> to vector<1x32xbf16>
      %c0_100 = arith.constant 0 : index
      %c0_101 = arith.constant 0 : index
      %247 = vector.load %arg18[%c0_100, %c0_101] : memref<32x17xbf16, #tpu.memory_space<vmem>>, vector<32x17xbf16>
      %cst_102 = arith.constant dense<0.000000e+00> : vector<1x17xf32>
      %248 = tpu.matmul %246, %247, %cst_102 {dimension_numbers = #tpu.dot_dimension_numbers<[1], [0], [0], [1], [0, 0, 1, 1], [], []>} : vector<1x32xbf16>, vector<32x17xbf16>, vector<1x17xf32> -> vector<1x17xf32>
      %249 = tpu.iota {dimensions = array<i32: 1>} : vector<1x17xi32>
      %c0_i32_103 = arith.constant 0 : i32
      %250 = vector.broadcast %c0_i32_103 : i32 to vector<1x17xi32>
      %251 = arith.cmpi eq, %249, %250 : vector<1x17xi32>
      %cst_104 = arith.constant 0xFF800000 : f32
      %252 = vector.broadcast %cst_104 : f32 to vector<1x17xf32>
      %253 = arith.select %251, %252, %248 : vector<1x17xi1>, vector<1x17xf32>
      %cst_105 = arith.constant dense<0xFF800000> : vector<1xf32>
      %254 = vector.multi_reduction <maximumf>, %253, %cst_105 [1] : vector<1x17xf32> to vector<1xf32>
      %255 = vector.shape_cast %254 : vector<1xf32> to vector<1x1xf32>
      %256 = vector.broadcast %255 : vector<1x1xf32> to vector<1x17xf32>
      %257 = arith.subf %253, %256 : vector<1x17xf32>
      %258 = math.exp %257 : vector<1x17xf32>
      %cst_106 = arith.constant dense<0.000000e+00> : vector<1xf32>
      %259 = vector.multi_reduction <add>, %258, %cst_106 [1] : vector<1x17xf32> to vector<1xf32>
      %260 = vector.shape_cast %259 : vector<1xf32> to vector<1x1xf32>
      %261 = math.log %260 : vector<1x1xf32>
      %262 = arith.addf %261, %255 : vector<1x1xf32>
      %263 = vector.broadcast %262 : vector<1x1xf32> to vector<1x17xf32>
      %264 = arith.subf %253, %263 : vector<1x17xf32>
      %c0_107 = arith.constant 0 : index
      %c0_108 = arith.constant 0 : index
      %c0_109 = arith.constant 0 : index
      %265 = vector.load %arg20[%c0_107, %c0_108, %c0_109] : memref<1x1x17xf32, #tpu.memory_space<vmem>>, vector<1x1x17xf32>
      %266 = vector.shape_cast %265 : vector<1x1x17xf32> to vector<1x17xf32>
      %267 = vector.shape_cast %264 : vector<1x17xf32> to vector<1x1x17xf32>
      tpu.vector_store %arg20[%c0_107, %c0_108, %c0_109], %267 {strides = array<i32>} : memref<1x1x17xf32, #tpu.memory_space<vmem>>, vector<1x1x17xf32>,
    } else {
    }
    return
  }
  func.func @transform_0(%arg0: i32, %arg1: i32) -> (i32, i32, i32) {
    %c0_i32 = arith.constant 0 : i32
    %c0_i32_0 = arith.constant 0 : i32
    %c0_i32_1 = arith.constant 0 : i32
    return %arg0, %c0_i32, %c0_i32_0 : i32, i32, i32
  }
  func.func @transform_1(%arg0: i32, %arg1: i32) -> (i32, i32, i32) {
    %c0_i32 = arith.constant 0 : i32
    %c0_i32_0 = arith.constant 0 : i32
    %c0_i32_1 = arith.constant 0 : i32
    return %arg0, %c0_i32, %c0_i32_0 : i32, i32, i32
  }
  func.func @transform_2(%arg0: i32, %arg1: i32) -> (i32, i32, i32) {
    %c0_i32 = arith.constant 0 : i32
    %c0_i32_0 = arith.constant 0 : i32
    %c0_i32_1 = arith.constant 0 : i32
    return %arg1, %c0_i32, %c0_i32_0 : i32, i32, i32
  }
  func.func @transform_3(%arg0: i32, %arg1: i32) -> (i32, i32, i32) {
    %c0_i32 = arith.constant 0 : i32
    %c0_i32_0 = arith.constant 0 : i32
    %c0_i32_1 = arith.constant 0 : i32
    return %arg1, %c0_i32, %c0_i32_0 : i32, i32, i32
  }
  func.func @transform_4(%arg0: i32, %arg1: i32) -> (i32, i32, i32) {
    %c0_i32 = arith.constant 0 : i32
    %c0_i32_0 = arith.constant 0 : i32
    %c0_i32_1 = arith.constant 0 : i32
    return %arg1, %c0_i32, %c0_i32_0 : i32, i32, i32
  }
  func.func @transform_5(%arg0: i32, %arg1: i32) -> (i32, i32, i32) {
    %c0_i32 = arith.constant 0 : i32
    %c0_i32_0 = arith.constant 0 : i32
    %c0_i32_1 = arith.constant 0 : i32
    return %arg1, %c0_i32, %c0_i32_0 : i32, i32, i32
  }
  func.func @transform_6(%arg0: i32, %arg1: i32) -> (i32, i32, i32) {
    %c0_i32 = arith.constant 0 : i32
    %c0_i32_0 = arith.constant 0 : i32
    %c0_i32_1 = arith.constant 0 : i32
    return %arg1, %c0_i32, %c0_i32_0 : i32, i32, i32
  }
  func.func @transform_7(%arg0: i32, %arg1: i32) -> (i32, i32, i32) {
    %c0_i32 = arith.constant 0 : i32
    %c0_i32_0 = arith.constant 0 : i32
    %c0_i32_1 = arith.constant 0 : i32
    return %arg1, %c0_i32, %c0_i32_0 : i32, i32, i32
  }
  func.func @transform_8(%arg0: i32, %arg1: i32) -> (i32, i32, i32) {
    %c0_i32 = arith.constant 0 : i32
    %c0_i32_0 = arith.constant 0 : i32
    %c0_i32_1 = arith.constant 0 : i32
    return %arg1, %c0_i32, %c0_i32_0 : i32, i32, i32
  }
  func.func @transform_9(%arg0: i32, %arg1: i32) -> (i32, i32, i32) {
    %c0_i32 = arith.constant 0 : i32
    %c0_i32_0 = arith.constant 0 : i32
    %c0_i32_1 = arith.constant 0 : i32
    return %arg1, %c0_i32, %c0_i32_0 : i32, i32, i32
  }
  func.func @transform_10(%arg0: i32, %arg1: i32) -> (i32, i32, i32) {
    %c0_i32 = arith.constant 0 : i32
    %c0_i32_0 = arith.constant 0 : i32
    %c0_i32_1 = arith.constant 0 : i32
    return %arg1, %c0_i32, %c0_i32_0 : i32, i32, i32
  }
  func.func @transform_11(%arg0: i32, %arg1: i32) -> (i32, i32, i32) {
    %c0_i32 = arith.constant 0 : i32
    %c0_i32_0 = arith.constant 0 : i32
    %c0_i32_1 = arith.constant 0 : i32
    return %arg1, %c0_i32, %c0_i32_0 : i32, i32, i32
  }
  func.func @transform_12(%arg0: i32, %arg1: i32) -> (i32, i32, i32) {
    %c0_i32 = arith.constant 0 : i32
    %c0_i32_0 = arith.constant 0 : i32
    %c0_i32_1 = arith.constant 0 : i32
    return %arg1, %c0_i32, %c0_i32_0 : i32, i32, i32
  }
  func.func @transform_13(%arg0: i32, %arg1: i32) -> (i32, i32, i32) {
    %c0_i32 = arith.constant 0 : i32
    %c0_i32_0 = arith.constant 0 : i32
    %c0_i32_1 = arith.constant 0 : i32
    return %arg1, %c0_i32, %c0_i32_0 : i32, i32, i32
  }
  func.func @transform_14(%arg0: i32, %arg1: i32) -> (i32, i32) {
    %c0_i32 = arith.constant 0 : i32
    %c0_i32_0 = arith.constant 0 : i32
    %c0_i32_1 = arith.constant 0 : i32
    return %c0_i32, %c0_i32_0 : i32, i32
  }
  func.func @transform_15(%arg0: i32, %arg1: i32) -> (i32, i32) {
    %c0_i32 = arith.constant 0 : i32
    %c0_i32_0 = arith.constant 0 : i32
    %c0_i32_1 = arith.constant 0 : i32
    return %c0_i32, %c0_i32_0 : i32, i32
  }
  func.func @transform_16(%arg0: i32, %arg1: i32) -> (i32, i32) {
    %c0_i32 = arith.constant 0 : i32
    %c0_i32_0 = arith.constant 0 : i32
    %c0_i32_1 = arith.constant 0 : i32
    return %c0_i32, %c0_i32_0 : i32, i32
  }
  func.func @transform_17(%arg0: i32, %arg1: i32) -> (i32, i32, i32) {
    %c0_i32 = arith.constant 0 : i32
    %c0_i32_0 = arith.constant 0 : i32
    %c0_i32_1 = arith.constant 0 : i32
    return %arg0, %c0_i32, %c0_i32_0 : i32, i32, i32
  }
  func.func @transform_18(%arg0: i32, %arg1: i32) -> (i32, i32, i32) {
    %c0_i32 = arith.constant 0 : i32
    %c0_i32_0 = arith.constant 0 : i32
    %c0_i32_1 = arith.constant 0 : i32
    return %arg0, %c0_i32, %c0_i32_0 : i32, i32, i32
  }
}

</mosaic_0001>

<bundles_post_ra>
// kernel: transformer_encoder_forward.1
= control target key start
LH: loop header
LB: loop body
LE: loop exit
PB: predicated region body
PF: predicated region fallthrough
CT: control target
= control target key end

     0   :  { %s3075_s0 = inlined_call_operand.vmem [shape: f32[2,16,32], index: 0, kind: input, shape index: {}]   ;;  %s3076_s1 = inlined_call_operand.vmem [shape: f32[2,1,16], index: 1, kind: input, shape index: {}]   ;;  %s3077_s2 = inlined_call_operand.vmem [shape: f32[2,1,32], index: 2, kind: input, shape index: {}]   ;;  %s3078_s3 = inlined_call_operand.vmem [shape: f32[2,1,32], index: 3, kind: input, shape index: {}]   ;;  %s3079_s4 = inlined_call_operand.vmem [shape: bf16[2,32,96], index: 4, kind: input, shape index: {}]   ;;  %s3080_s5 = inlined_call_operand.vmem [shape: f32[2,1,96], index: 5, kind: input, shape index: {}]   ;;  %s3081_s6 = inlined_call_operand.vmem [shape: bf16[2,32,32], index: 6, kind: input, shape index: {}]   ;;  %s3082_s7 = inlined_call_operand.vmem [shape: f32[2,1,32], index: 7, kind: input, shape index: {}]   ;;  %s3083_s8 = inlined_call_operand.vmem [shape: f32[2,1,32], index: 8, kind: input, shape index: {}]   ;;  %s3084_s9 = inlined_call_operand.vmem [shape: f32[2,1,32], index: 9, kind: input, shape index: {}]   ;;  %s3085_s10 = inlined_call_operand.vmem [shape: bf16[2,32,64], index: 10, kind: input, shape index: {}]   ;;  %s3086_s11 = inlined_call_operand.vmem [shape: f32[2,1,64], index: 11, kind: input, shape index: {}]   ;;  %s3087_s12 = inlined_call_operand.vmem [shape: bf16[2,64,32], index: 12, kind: input, shape index: {}]   ;;  %s3088_s13 = inlined_call_operand.vmem [shape: f32[2,1,32], index: 13, kind: input, shape index: {}]   ;;  %s3089_s14 = inlined_call_operand.vmem [shape: f32[1,32], index: 14, kind: input, shape index: {}]   ;;  %s3090_s15 = inlined_call_operand.vmem [shape: f32[1,32], index: 15, kind: input, shape index: {}]   ;;  %s3091_s16 = inlined_call_operand.vmem [shape: bf16[32,17], index: 16, kind: input, shape index: {}]   ;;  %s3092_s17 = inlined_call_operand.vmem [shape: f32[2,16,32], index: 17, kind: output, shape index: {0}]   ;;  %s3093_s18 = inlined_call_operand.hbm [shape: f32[2,1,17], index: 18, kind: output, shape index: {1}]  }
   0x1   :  { %3108 = sst [smem:[#allocation19_spill]] %s3075_s0 }
   0x2   :  { %3109 = sst [smem:[#allocation20_spill]] %s3076_s1 }
   0x3   :  { %3110 = sst [smem:[#allocation21_spill]] %s3077_s2 }
   0x4   :  { %3111 = sst [smem:[#allocation22_spill]] %s3079_s4 }
   0x5   :  { %3112 = sst [smem:[#allocation23_spill]] %s3081_s6 }
   0x6   :  { %3113 = sst [smem:[#allocation24_spill]] %s3082_s7 }
   0x7   :  { %3114 = sst [smem:[#allocation25_spill]] %s3083_s8 }
   0x8   :  { %3115 = sst [smem:[#allocation26_spill]] %s3086_s11 }
   0x9   :  { %3116 = sst [smem:[#allocation27_spill]] %s3087_s12 }
   0xa   :  { %3117 = sst [smem:[#allocation28_spill]] %s3088_s13 }
   0xb   :  { %3118 = sst [smem:[#allocation29_spill]] %s3089_s14 }
   0xc   :  { %3119 = sst [smem:[#allocation30_spill]] %s3090_s15 }
   0xd   :  { %3120 = sst [smem:[#allocation31_spill]] %s3091_s16 }
   0xe   :  { %3121 = sst [smem:[#allocation32_spill]] %s3092_s17 }
   0xf   :  { %3122 = sst [smem:[#allocation33_spill]] %s3093_s18 }
  0x10   :  { %24 = vsyncpa [#allocation5], 0 }
  0x11   :  { %26 = vsyncpa [#allocation5 + $0x1], 0  ;;  %s2675_s27 = smov 0   ;;  %s2677_s28 = smov 0  }
  0x12   :  { %s2679_s29 = smov 0   ;;  %s2681_s30 = smov 0  }
  0x13   :  { %s2683_s0 = smov 0   ;;  %s2685_s19 = smov 0  }
  0x14   :  { %s2687_s1 = smov 0   ;;  %s2689_s20 = smov 0  }
  0x15 LB: > { %3123 = sst [smem:[#allocation7_spill]] %s2531_s27  ;;  %s2123_s21 = sadd.s32 4294967295, %s2559_s20   ;;  %s2559_s20 = sphi %s2689_s20, %s32_s20   ;;  %s2555_s1 = sphi %s2687_s1, %s3181_s1   ;;  %s2551_s19 = sphi %s2685_s19, %s3180_s19   ;;  %s2547_s0 = sphi %s2683_s0, %s3179_s0   ;;  %s2543_s30 = sphi %s2681_s30, %s3178_s30   ;;  %s2539_s29 = sphi %s2679_s29, %s3177_s29   ;;  %s2535_s28 = sphi %s2677_s28, %s3183_s28   ;;  %s2531_s27 = sphi %s2675_s27, %s3182_s27  }
  0x16   : > { %3124 = sst [smem:[#allocation8_spill]] %s2539_s29  ;;  %s2124_s22 = sadd.s32 4294967294, %s2559_s20  }
  0x17   : > { %3125 = sst [smem:[#allocation9_spill]] %s2543_s30  ;;  %s41_s2 = sadd.s32 1, %s2551_s19 }
  0x18   : > { %3126 = sst [smem:[#allocation10_spill]] %s2547_s0  ;;  %p42_p0 = scmp.ge.s32.totalorder %s41_s2, 2 }
  0x19   : > { %3127 = sst [smem:[#allocation11_spill]] %s2551_s19  ;;  %s44_s23 = sadd.s32 1, %s2555_s1 }
  0x1a   : > { %3128 = sst [smem:[#allocation12_spill]] %s2555_s1  ;;  %p514_p1 = scmp.ne.s32.totalorder %s2539_s29, %s2535_s28 }
  0x1b   : > { %3129 = sst [smem:[#allocation13_spill]] %s2559_s20  ;;  %p515_p2 = scmp.eq.s32.totalorder %s2123_s21, 3 }
  0x1c   : > { %s3185_s2 = smov (%p42_p0, %s41_s2), 0  ;;  %s3187_s23 = smov (!%p42_p0, %s44_s23), %s2555_s1 }
  0x1d   : > { %3130 = sst [smem:[#allocation14_spill]] %s3185_s2  ;;  %p2724_p3 = por %p515_p2, %p514_p1 }
  0x1e   : > { %p520_p4 = scmp.ne.s32.totalorder %s2535_s28, %s2531_s27  ;;  %p46_p5 = scmp.ge.s32.totalorder %s3187_s23, 2 }
  0x1f   : > { %s3131_s24 = scalar_select %p2724_p3, 1, 0 }
  0x20   : > { %p521_p6 = scmp.eq.s32.totalorder %s2124_s22, 3  ;;  %p2127_p7 = scmp.ge.s32.totalorder %s2559_s20, 1 }
  0x21   : > { %3132 = sst [smem:[#allocation15_spill]] %s3131_s24  ;;  %p642_p8 = scmp.lt.s32.totalorder %s2559_s20, 5 }
  0x22   : > { %s3189_s23 = smov (%p46_p5, %s3187_s23), 0  ;;  %p2734_p9 = por %p521_p6, %p520_p4 }
  0x23   : > { %3133 = sst [smem:[#allocation16_spill]] %s3189_s23  ;;  %p643_p10 = pnand %p2127_p7, %p642_p8 }
  0x24   : > { %s3134_s25 = scalar_select %p2734_p9, 1, 0 }
  0x25   : > { %s501_s26 = ssub.s32 %s2555_s1, %s3189_s23  ;;  %s504_s21 = sadd.s32 1, %s2539_s29 }
  0x26   : > { %3135 = sst [smem:[#allocation17_spill]] %s3134_s25  ;;  %p502_p11 = scmp.eq.s32.totalorder %s501_s26, 0 }
  0x27   : > { %646 = sbr.rel (%p643_p10) target bundleno = 3346 (0xd12), region = 88  ;;  %p747_p12 = scmp.lt.s32.totalorder (!%p643_p10), %s2547_s0, 1 }
  0x28   : > { %s2742_s2 = scalar_select %p502_p11, %s2539_s29, %s504_s21  }
  0x29   : > { %p755_p13 = scmp.lt.s32.totalorder (!%p643_p10), %s2543_s30, 1  ;;  %s3138_s27 = sld [smem:[#allocation19_spill]] (!%p643_p10) }
  0x2a   : > { %3136 = sst [smem:[#allocation18_spill]] %s2742_s2  ;;  %s3140_s4 = sld [smem:[#allocation22_spill]] (!%p643_p10) }
  0x2b   : > { %s3141_s6 = sld [smem:[#allocation23_spill]] (!%p643_p10)  ;;  %s3144_s29 = sld [smem:[#allocation26_spill]] (!%p643_p10) }
  0x2c   : > { %s3145_s14 = sld [smem:[#allocation28_spill]] (!%p643_p10)  ;;  %s3146_s1 = sld [smem:[#allocation27_spill]] (!%p643_p10) }
  0x2e   : > { %s2748_s19 = scalar_select %p747_p12, %s2547_s0, 1 }
  0x2f   : > { %s2751_s25 = scalar_select %p755_p13, %s2543_s30, 1 }
  0x30   : > { %s2181_s26 = sshll.u32 %s2748_s19, 4  ;;  %s3147_s30 = sld [smem:[#allocation32_spill]] }
  0x31   : > { %s751_s20 = scalar_lea.vmem %s3138_s27, %s2181_s26  ;;  %s2182_s17 = sshll.u32 %s2751_s25, 4 }
  0x32   : > { %s2773_s11 = scalar_lea.vmem %s3140_s4, %s2182_s17  ;;  %s2782_s18 = scalar_lea.vmem %s3141_s6, %s2182_s17 }
  0x33   : > { %s2799_s22 = scalar_lea.vmem %s3085_s10, %s2182_s17  ;;  %s790_s4 = scalar_lea.vmem %s3144_s29, %s2751_s25 }
  0x34   : > { %s2185_s6 = sshll.u32 %s2751_s25, 5  ;;  %s798_s7 = scalar_lea.vmem %s3145_s14, %s2751_s25 }
  0x35   : > { %s2813_s8 = scalar_lea.vmem %s3146_s1, %s2185_s6  ;;  %s3148_s17 = sand.u32 1, %s2535_s28  }
  0x36   : > { %s2818_s15 = scalar_lea.vmem %s3147_s30, %s2181_s26  ;;  %s2822_s23 = scalar_lea.vmem [#allocation4], %s3148_s17 }
  0x37   : > { %s3149_s27 = sld [smem:[#allocation9_spill]] }
  0x3d   : > { %p2140_p0 = scmp.ne.s32.totalorder %s3149_s27, 0 }
  0x3e   : > { %v809_v0 = vld [vmem:[%s751_s20] sm:$0xff] (!%p2140_p0)  ;;  %vm811_vm0 = vcmask (!%p2140_p0), 261120   ;;  %v810_v1 = vld [vmem:[%s751_s20 + $0x8] sm:$0xff] (!%p2140_p0) }
  0x3f   : > { %808 = sbr.rel (%p2140_p0) target bundleno = 70 (0x46), region = 92  ;;  %812 = vst.msk [vmem:[#allocation2] sm:$0xff] (!%p2140_p0), %vm811_vm0, %v809_v0  ;;  %813 = vst.msk [vmem:[#allocation2 + $0x8] sm:$0xff] (!%p2140_p0), %vm811_vm0, %v810_v1 }
  0x46 PF: > { %v2825_v2 = vld [vmem:[#allocation2] sm:$0xff]  ;;  %vm819_vm1 = vcmask 261120   ;;  %v2827_v3 = vld [vmem:[#allocation2 + $0x8] sm:$0xff]  ;;  %v2561_v17 = vmov 0.0   ;;  %vm2562_vm2 = vmmov 0   ;;  %s3150_s30 = sld [smem:[#allocation21_spill]]  ;;  %s3152_s29 = scalar_lea.vmem %s3078_s3, %s2751_s25 }
  0x47   : > { %v820_v4 = vsel %vm819_vm1, %v2825_v2, 0.0  ;;  %v823_v5 = vsel %vm819_vm1, %v2827_v3, 0.0  ;;  %v2401_v16 = vld [vmem:[%s2773_s11] sm:$0xff]   ;;  %2220 = vmatprep.subr.bf16.mxu0 %v2561_v17  ;;  %2228 = vmatprep.subr.bf16.mxu1 %v2561_v17  ;;  %v2402_v18 = vld [vmem:[%s2773_s11 + $0x8] sm:$0xff]   ;;  %s3153_s0 = scalar_lea.vmem %s3080_s5, %s2751_s25  ;;  %s2563_s24 = smov 88   ;;  %vm944_vm3 = vcmask 64512  }
  0x48   : > { %821 = vadd.xlane.f32.xlu0 %v820_v4  ;;  %2221 = vmatpush3.bf16.msra.mxu0 %v2401_v16  ;;  %v2142_v31 = vld [vmem:[%s3152_s29] ss:$0 sm:$0xff]  ;;  %s2564_s16 = smov 96   ;;  %s2565_s21 = smov 112   ;;  %vm992_vm4 = vcmask 130048   ;;  %vm1195_vm5 = vcmask 130112  }
  0x49   : > { %2224 = vmatprep.mubr.msk.bf16.mxu0 %vm2562_vm2, %v2561_v17  ;;  %2222 = vmatprep.subr.bf16.mxu0 %v2561_v17  ;;  %v2143_v36 = vld [vmem:[%s3153_s0] ss:$0 sm:$0xff]  ;;  %s2566_s12 = smov 120   ;;  %s2567_s13 = smov 104   ;;  %vm1327_vm6 = vcmask 195712   ;;  %vm1459_vm7 = vcmask 261312  }
  0x4a   : > { %2230 = vmatprep.mubr.msk.bf16.mxu1 %vm2562_vm2, %v2561_v17  ;;  %s2568_s17 = smov 80   ;;  %s2569_s27 = smov 72   ;;  %vm1704_vm8 = vcmask 523264  }
  0x4b   : > { %s2570_s6 = smov 64   ;;  %s2572_s26 = smov 40  }
  0x4c   : > { %824 = vadd.xlane.f32.xlu0 %v823_v5  ;;  %2223 = vmatpush3.bf16.msra.mxu0 %v2402_v18  ;;  %s3151_s1 = scalar_lea.vmem %s3150_s30, %s2751_s25  ;;  %s2573_s29 = smov 56  }
  0x4d   : > { %2234 = vmatprep.subr.bf16.mxu0 %v2561_v17  ;;  %v2141_v27 = vld [vmem:[%s3151_s1] ss:$0 sm:$0xff]  ;;  %s3154_s1 = sld [smem:[#allocation20_spill]]  ;;  %s2574_s14 = smov 8  }
  0x4e   : > { %s2575_s2 = smov 16   ;;  %s2576_s0 = smov 24  }
  0x4f   : > { %s3160_s11 = scalar_lea.vmem %s3084_s9, %s2751_s25 }
  0x53   : > { %s3155_s20 = scalar_lea.vmem %s3154_s1, %s2748_s19  ;;  %s2571_s19 = smov 48  }
  0x54   : > { %v2147_v59 = vld [vmem:[%s3155_s20] ss:$0 sm:$0xff] }
  0xd5   : > { %v822_v6 = vpop.xlane.xlu0 %821 }
  0xd6   : > { %v827_v7 = vmul.f32 0.03125, %v822_v6 }
  0xd8   : > { %v829_v8 = vsub.f32 %v2825_v2, %v827_v7 }
  0xd9   : > { %v825_v9 = vpop.xlane.xlu0 %824 }
  0xda   : > { %v828_v10 = vmul.f32 0.03125, %v825_v9  ;;  %v831_v11 = vmul.f32 %v829_v8, %v829_v8 }
  0xdc   : > { %v830_v12 = vsub.f32 %v2827_v3, %v828_v10  ;;  %v833_v13 = vsel %vm819_vm1, %v831_v11, 0.0 }
  0xdd   : > { %834 = vadd.xlane.f32.xlu1 %v833_v13 }
  0xde   : > { %v832_v14 = vmul.f32 %v830_v12, %v830_v12 }
  0xe0   : > { %v836_v15 = vsel %vm819_vm1, %v832_v14, 0.0 }
  0xe1   : > { %837 = vadd.xlane.f32.xlu1 %v836_v15 }
 0x16a   : > { %v835_v19 = vpop.xlane.xlu1 %834 }
 0x16b   : > { %v839_v20 = vmul.f32 0.03125, %v835_v19 }
 0x16d   : > { %v841_v21 = vadd.f32 1e-06, %v839_v20 }
 0x16e   : > { %v838_v22 = vpop.xlane.xlu1 %837 }
 0x16f   : > { %2411 = vrsqrt.f32 %v841_v21  ;;  %v840_v23 = vmul.f32 0.03125, %v838_v22 }
 0x171   : > { %v842_v24 = vadd.f32 1e-06, %v840_v23 }
 0x173   : > { %2413 = vrsqrt.f32 %v842_v24 }
 0x179   : > { %v2412_v25 = vpop.eup %2411 }
 0x17a   : > { %v845_v26 = vmul.f32 %v2412_v25, %v829_v8 }
 0x17c   : > { %v853_v30 = vmul.f32 %v2141_v27, %v845_v26 }
 0x17d   : > { %v2414_v28 = vpop.eup %2413 }
 0x17e   : > { %v846_v29 = vmul.f32 %v2414_v28, %v830_v12  ;;  %v861_v33 = vadd.f32 %v2142_v31, %v853_v30 }
 0x180   : > { %v854_v32 = vmul.f32 %v2141_v27, %v846_v29 }
 0x182   : > { %v862_v34 = vadd.f32 %v2142_v31, %v854_v32 }
 0x184   : > { %v863_v35 = vpack.c.bf16 %v862_v34, %v861_v33 }
 0x186   : > { %2225 = vmatmul.mubr.msk.bf16.vlgmr.msra.gmra.mrb[0].mxu0 %vm819_vm1, %v863_v35 }
 0x187   : > { %2236 = vmatprep.mubr.msk.bf16.mxu0 %vm2562_vm2, %v2561_v17 }
 0x259   : > { %v924_v37 = vpop.f32.mrb[0].mxu0 }
 0x25a   : > { %v925_v38 = vadd.f32 %v2143_v36, %v924_v37  ;;  %v2226_v39 = vpop.f32.mrb[1].mxu0 }
 0x25b   : > { %v927_v40 = vpop.f32.mrb[2].mxu0 }
 0x25c   : > { %v928_v41 = vadd.f32 %v2143_v36, %v927_v40  ;;  %v2227_v42 = vpop.f32.mrb[3].mxu0  ;;  %v931_v43 = vmul.f32 0.35355338, %v925_v38 }
 0x25e   : > { %v932_v44 = vmul.f32 0.35355338, %v928_v41  ;;  %v2865_v45 = vpack.c.bf16 %v928_v41, %v925_v38 }
 0x260   : > { %v933_v46 = vpack.c.bf16 %v932_v44, %v931_v43  ;;  %1068 = vrot.lane.b32.xlu1 %v2865_v45, %s2563_s24  ;;  %942 = vrot.lane.b32.xlu0 %v2865_v45, %s2564_s16  ;;  %s3156_s16 = sld [smem:[#allocation24_spill]] }
 0x264   : > { %1198 = vrot.lane.b32.xlu0 %v933_v46, %s2565_s21  ;;  %1066 = vrot.lane.b32.xlu1 %v933_v46, %s2566_s12 }
 0x266   : > { %s3157_s21 = scalar_lea.vmem %s3156_s16, %s2751_s25 }
 0x268   : > { %1330 = vrot.lane.b32.xlu0 %v933_v46, %s2567_s13  ;;  %1200 = vrot.lane.b32.xlu1 %v2865_v45, %s2568_s17  ;;  %s3158_s17 = sld [smem:[#allocation25_spill]] }
 0x26c   : > { %1332 = vrot.lane.b32.xlu1 %v2865_v45, %s2569_s27 }
 0x270   : > { %1014 = vrot.lane.b32.xlu1 %v2865_v45, %s2570_s6 }
 0x2d2   : > { %v1069_v47 = vpop.permute.xlu1 %1068  ;;  %v943_v48 = vpop.permute.xlu0 %942 }
 0x2d3   : > { %v949_v49 = vsel %vm944_vm3, %v943_v48, 0  ;;  %v1074_v52 = vsel %vm944_vm3, %v1069_v47, 0 }
 0x2d4   : > { %2229 = vmatpush3.bf16.xpose.msra.mxu1 %v949_v49 }
 0x2d5   : > { %2240 = vmatprep.subr.bf16.mxu1 %v2561_v17 }
 0x2d6   : > { %v1067_v50 = vpop.permute.xlu1 %1066  ;;  %v1199_v56 = vpop.permute.xlu0 %1198 }
 0x2da   : > { %v1201_v51 = vpop.permute.xlu1 %1200  ;;  %v1331_v58 = vpop.permute.xlu0 %1330 }
 0x2db   : > { %2231 = vmatmul.mubr.msk.bf16.vlgmr.msra.gmra.mrb[0].mxu1 %vm944_vm3, %v933_v46  ;;  %v1206_v55 = vsel %vm944_vm3, %v1201_v51, 0 }
 0x2dc   : > { %2241 = vmatpush3.bf16.xpose.msra.mxu1 %v1074_v52  ;;  %2242 = vmatprep.mubr.msk.bf16.mxu1 %vm2562_vm2, %v2561_v17 }
 0x2dd   : > { %2252 = vmatprep.subr.bf16.mxu1 %v2561_v17 }
 0x2de   : > { %v1333_v53 = vpop.permute.xlu1 %1332 }
 0x2df   : > { %v1338_v57 = vsel %vm944_vm3, %v1333_v53, 0 }
 0x2e2   : > { %v1015_v54 = vpop.permute.xlu1 %1014 }
 0x2e3   : > { %2235 = vmatpush3.bf16.msra.mxu0 %v1015_v54  ;;  %2243 = vmatmul.mubr.msk.bf16.vlgmr.msra.gmra.mrb[4].mxu1 %vm944_vm3, %v1067_v50 }
 0x2e4   : > { %2253 = vmatpush3.bf16.xpose.msra.mxu1 %v1206_v55  ;;  %2254 = vmatprep.mubr.msk.bf16.mxu1 %vm2562_vm2, %v2561_v17 }
 0x2e5   : > { %2264 = vmatprep.subr.bf16.mxu1 %v2561_v17  ;;  %2246 = vmatprep.subr.bf16.mxu0 %v2561_v17 }
 0x2eb   : > { %2255 = vmatmul.mubr.msk.bf16.vlgmr.msra.gmra.mrb[8].mxu1 %vm944_vm3, %v1199_v56 }
 0x2ec   : > { %2265 = vmatpush3.bf16.xpose.msra.mxu1 %v1338_v57  ;;  %2266 = vmatprep.mubr.msk.bf16.mxu1 %vm2562_vm2, %v2561_v17 }
 0x2ed   : > { %2276 = vmatprep.subr.bf16.mxu1 %v2561_v17 }
 0x2f3   : > { %2267 = vmatmul.mubr.msk.bf16.vlgmr.msra.gmra.mrb[12].mxu1 %vm944_vm3, %v1331_v58 }
 0x2f4   : > { %2280 = vmatprep.mubr.msk.bf16.mxu1 %vm2562_vm2, %v2561_v17 }
 0x3ae   : > { %v985_v60 = vpop.f32.mrb[0].mxu1 }
 0x3af   : > { %v986_v61 = vadd.f32 %v2147_v59, %v985_v60  ;;  %v2232_v62 = vpop.f32.mrb[1].mxu1 }
 0x3b0   : > { %v988_v63 = vpop.f32.mrb[2].mxu1 }
 0x3b1   : > { %v989_v0 = vadd.f32 %v2147_v59, %v988_v63  ;;  %v2233_v1 = vpop.f32.mrb[3].mxu1  ;;  %v993_v4 = vsel %vm992_vm4, %v986_v61, -inf }
 0x3b2   : > { %994 = vmax.xlane.f32.xlu1 %v993_v4 }
 0x3b3   : > { %v996_v5 = vsel %vm992_vm4, %v989_v0, -inf }
 0x3b4   : > { %997 = vmax.xlane.f32.xlu0 %v996_v5 }
 0x3b6   : > { %v1110_v6 = vpop.f32.mrb[4].mxu1 }
 0x3b7   : > { %v1111_v7 = vadd.f32 %v2147_v59, %v1110_v6  ;;  %v2244_v8 = vpop.f32.mrb[5].mxu1 }
 0x3b8   : > { %v1113_v9 = vpop.f32.mrb[6].mxu1 }
 0x3b9   : > { %v1114_v10 = vadd.f32 %v2147_v59, %v1113_v9  ;;  %v2245_v11 = vpop.f32.mrb[7].mxu1  ;;  %v1117_v12 = vsel %vm992_vm4, %v1111_v7, -inf }
 0x3ba   : > { %1118 = vmax.xlane.f32.xlu0 %v1117_v12 }
 0x3bb   : > { %v1120_v13 = vsel %vm992_vm4, %v1114_v10, -inf }
 0x3be   : > { %1121 = vmax.xlane.f32.xlu0 %v1120_v13  ;;  %v1242_v14 = vpop.f32.mrb[8].mxu1 }
 0x3bf   : > { %v1243_v15 = vadd.f32 %v2147_v59, %v1242_v14  ;;  %v2256_v16 = vpop.f32.mrb[9].mxu1 }
 0x3c0   : > { %v1245_v18 = vpop.f32.mrb[10].mxu1 }
 0x3c1   : > { %v1246_v19 = vadd.f32 %v2147_v59, %v1245_v18  ;;  %v2257_v20 = vpop.f32.mrb[11].mxu1  ;;  %v1249_v21 = vsel %vm992_vm4, %v1243_v15, -inf }
 0x3c2   : > { %1250 = vmax.xlane.f32.xlu1 %v1249_v21 }
 0x3c3   : > { %v1252_v22 = vsel %vm992_vm4, %v1246_v19, -inf }
 0x3c4   : > { %1253 = vmax.xlane.f32.xlu0 %v1252_v22 }
 0x3c6   : > { %v1374_v23 = vpop.f32.mrb[12].mxu1 }
 0x3c7   : > { %v1375_v24 = vadd.f32 %v2147_v59, %v1374_v23  ;;  %v2268_v25 = vpop.f32.mrb[13].mxu1 }
 0x3c8   : > { %v1377_v26 = vpop.f32.mrb[14].mxu1 }
 0x3c9   : > { %v1378_v27 = vadd.f32 %v2147_v59, %v1377_v26  ;;  %v2269_v28 = vpop.f32.mrb[15].mxu1  ;;  %v1381_v29 = vsel %vm992_vm4, %v1375_v24, -inf }
 0x3ca   : > { %1382 = vmax.xlane.f32.xlu1 %v1381_v29 }
 0x3cb   : > { %v1384_v30 = vsel %vm992_vm4, %v1378_v27, -inf }
 0x3cc   : > { %1385 = vmax.xlane.f32.xlu0 %v1384_v30 }
 0x3db   : > { %1270 = vrot.lane.b32.xlu1 %v2865_v45, %s2571_s19 }
 0x3df   : > { %1402 = vrot.lane.b32.xlu1 %v2865_v45, %s2572_s26  ;;  %s3163_s26 = sld [smem:[#allocation9_spill]] }
 0x3e2   : > { %1138 = vrot.lane.b32.xlu0 %v2865_v45, %s2573_s29 }
 0x3e5   : > { %p2172_p1 = scmp.ne.s32.totalorder %s3163_s26, 1 }
 0x3e6   : > { %s3164_s29 = sld [smem:[#allocation31_spill]] (!%p2172_p1)  ;;  %vm2578_vm9 = vmmov (!%p2172_p1), 0   ;;  %s3166_s16 = sld [smem:[#allocation29_spill]] (!%p2172_p1)  ;;  %vm1867_vm11 = vcmask (!%p2172_p1), 131072  }
 0x3e7   : > { %s3167_s13 = sld [smem:[#allocation30_spill]] (!%p2172_p1) }
 0x43f   : > { %v995_v31 = vpop.xlane.xlu1 %994 }
 0x440   : > { %v999_v32 = vsub.f32 %v986_v61, %v995_v31 }
 0x441   : > { %v998_v33 = vpop.xlane.xlu0 %997 }
 0x442   : > { %v1001_v34 = vmul.f32 1.442695, %v999_v32  ;;  %v1000_v35 = vsub.f32 %v989_v0, %v998_v33 }
 0x444   : > { %v1003_v36 = vmul.f32 1.442695, %v1000_v35  ;;  %2415 = vpow2.f32 %v1001_v34 }
 0x446   : > { %2417 = vpow2.f32 %v1003_v36 }
 0x447   : > { %v1119_v37 = vpop.xlane.xlu0 %1118 }
 0x448   : > { %v1123_v38 = vsub.f32 %v1111_v7, %v1119_v37 }
 0x44a   : > { %v1125_v39 = vmul.f32 1.442695, %v1123_v38 }
 0x44b   : > { %v1122_v40 = vpop.xlane.xlu0 %1121 }
 0x44c   : > { %2419 = vpow2.f32 %v1125_v39  ;;  %v1124_v41 = vsub.f32 %v1114_v10, %v1122_v40 }
 0x44e   : > { %v1127_v42 = vmul.f32 1.442695, %v1124_v41  ;;  %v2416_v43 = vpop.eup %2415 }
 0x44f   : > { %v1251_v44 = vpop.xlane.xlu1 %1250  ;;  %v1005_v13 = vsel %vm992_vm4, %v2416_v43, 0.0 }
 0x450   : > { %v2418_v46 = vpop.eup %2417  ;;  %2421 = vpow2.f32 %v1127_v42  ;;  %v1255_v45 = vsub.f32 %v1243_v15, %v1251_v44 }
 0x451   : > { %v1254_v47 = vpop.xlane.xlu0 %1253  ;;  %v1013_v48 = vpack.c.bf16 %v2418_v46, %v2416_v43  ;;  %v1008_v14 = vsel %vm992_vm4, %v2418_v46, 0.0  ;;  %v2403_v43 = vld [vmem:[%s2782_s18] sm:$0xff]  }
 0x452   : > { %v1257_v49 = vmul.f32 1.442695, %v1255_v45  ;;  %v1256_v50 = vsub.f32 %v1246_v19, %v1254_v47  ;;  %2277 = vmatpush3.bf16.msra.mxu1 %v2403_v43  ;;  %v2404_v47 = vld [vmem:[%s2782_s18 + $0x8] sm:$0xff]  }
 0x453   : > { %2237 = vmatmul.mubr.msk.bf16.vlgmr.msra.gmra.mrb[4].mxu0 %vm992_vm4, %v1013_v48  ;;  %2278 = vmatprep.subr.bf16.mxu1 %v2561_v17 }
 0x454   : > { %2423 = vpow2.f32 %v1257_v49  ;;  %v1259_v51 = vmul.f32 1.442695, %v1256_v50  ;;  %2248 = vmatprep.mubr.msk.bf16.mxu0 %vm2562_vm2, %v2561_v17 }
 0x456   : > { %v2420_v52 = vpop.eup %2419  ;;  %2425 = vpow2.f32 %v1259_v51  ;;  %2279 = vmatpush3.bf16.msra.mxu1 %v2404_v47  ;;  %v2409_v47 = vld [vmem:[%s2813_s8 + $0x10] sm:$0xff]  }
 0x457   : > { %v1383_v53 = vpop.xlane.xlu1 %1382  ;;  %v1129_v54 = vsel %vm992_vm4, %v2420_v52, 0.0  ;;  %2292 = vmatprep.subr.bf16.mxu1 %v2561_v17 }
 0x458   : > { %v1387_v55 = vsub.f32 %v1375_v24, %v1383_v53  ;;  %1130 = vadd.xlane.f32.xlu1 %v1129_v54 }
 0x459   : > { %v1386_v56 = vpop.xlane.xlu0 %1385 }
 0x45a   : > { %v2422_v57 = vpop.eup %2421  ;;  %v1389_v58 = vmul.f32 1.442695, %v1387_v55  ;;  %v1388_v59 = vsub.f32 %v1378_v27, %v1386_v56 }
 0x45b   : > { %v1132_v60 = vsel %vm992_vm4, %v2422_v57, 0.0  ;;  %v1137_v1 = vpack.c.bf16 %v2422_v57, %v2420_v52  ;;  %v1271_v5 = vpop.permute.xlu1 %1270 }
 0x45c   : > { %2427 = vpow2.f32 %v1389_v58  ;;  %v1391_v61 = vmul.f32 1.442695, %v1388_v59  ;;  %1133 = vadd.xlane.f32.xlu0 %v1132_v60 }
 0x45d   : > { %v1139_v62 = vpop.permute.xlu0 %1138 }
 0x45e   : > { %v2424_v63 = vpop.eup %2423  ;;  %2429 = vpow2.f32 %v1391_v61  ;;  %2247 = vmatpush3.bf16.msra.mxu0 %v1139_v62 }
 0x45f   : > { %v1261_v0 = vsel %vm992_vm4, %v2424_v63, 0.0  ;;  %2258 = vmatprep.subr.bf16.mxu0 %v2561_v17  ;;  %v1403_v11 = vpop.permute.xlu1 %1402 }
 0x460   : > { %v2426_v4 = vpop.eup %2425  ;;  %1262 = vadd.xlane.f32.xlu0 %v1261_v0 }
 0x461   : > { %2249 = vmatmul.mubr.msk.bf16.vlgmr.msra.gmra.mrb[8].mxu0 %vm992_vm4, %v1137_v1  ;;  %v1264_v6 = vsel %vm992_vm4, %v2426_v4, 0.0  ;;  %v1269_v9 = vpack.c.bf16 %v2426_v4, %v2424_v63 }
 0x462   : > { %2259 = vmatpush3.bf16.msra.mxu0 %v1271_v5  ;;  %2260 = vmatprep.mubr.msk.bf16.mxu0 %vm2562_vm2, %v2561_v17 }
 0x463   : > { %2270 = vmatprep.subr.bf16.mxu0 %v2561_v17 }
 0x464   : > { %1265 = vadd.xlane.f32.xlu0 %v1264_v6  ;;  %v2156_v6 = vld [vmem:[%s3157_s21] ss:$0 sm:$0xff] }
 0x466   : > { %v2428_v7 = vpop.eup %2427 }
 0x467   : > { %v1393_v8 = vsel %vm992_vm4, %v2428_v7, 0.0 }
 0x468   : > { %v2430_v10 = vpop.eup %2429  ;;  %1394 = vadd.xlane.f32.xlu1 %v1393_v8 }
 0x469   : > { %2261 = vmatmul.mubr.msk.bf16.vlgmr.msra.gmra.mrb[12].mxu0 %vm992_vm4, %v1269_v9  ;;  %v1396_v12 = vsel %vm992_vm4, %v2430_v10, 0.0  ;;  %v1401_v15 = vpack.c.bf16 %v2430_v10, %v2428_v7 }
 0x46a   : > { %2271 = vmatpush3.bf16.msra.mxu0 %v1403_v11  ;;  %1397 = vadd.xlane.f32.xlu0 %v1396_v12 }
 0x46b   : > { %2272 = vmatprep.mubr.msk.bf16.mxu0 %vm2562_vm2, %v2561_v17  ;;  %2284 = vmatprep.subr.bf16.mxu0 %v2561_v17 }
 0x46c   : > { %1006 = vadd.xlane.f32.xlu1 %v1005_v13 }
 0x46e   : > { %1009 = vadd.xlane.f32.xlu0 %v1008_v14 }
 0x471   : > { %2273 = vmatmul.mubr.msk.bf16.vlgmr.msra.gmra.mrb[16].mxu0 %vm992_vm4, %v1401_v15 }
 0x472   : > { %2288 = vmatprep.mubr.msk.bf16.mxu0 %vm2562_vm2, %v2561_v17 }
 0x4e5   : > { %v1131_v19 = vpop.xlane.xlu1 %1130 }
 0x4e9   : > { %v1134_v16 = vpop.xlane.xlu0 %1133 }
 0x4ed   : > { %v1263_v18 = vpop.xlane.xlu0 %1262 }
 0x4f1   : > { %v1266_v20 = vpop.xlane.xlu0 %1265 }
 0x4f5   : > { %v1395_v21 = vpop.xlane.xlu1 %1394 }
 0x4f7   : > { %v1398_v22 = vpop.xlane.xlu0 %1397 }
 0x4f9   : > { %v1007_v23 = vpop.xlane.xlu1 %1006 }
 0x4fa   : > { %2431 = vrcp.f32 %v1007_v23 }
 0x4fb   : > { %v1010_v24 = vpop.xlane.xlu0 %1009 }
 0x4fc   : > { %2433 = vrcp.f32 %v1010_v24 }
 0x4fd   : > { %2435 = vrcp.f32 %v1131_v19 }
 0x4fe   : > { %2437 = vrcp.f32 %v1134_v16 }
 0x4ff   : > { %2439 = vrcp.f32 %v1263_v18 }
 0x500   : > { %2441 = vrcp.f32 %v1266_v20 }
 0x501   : > { %2443 = vrcp.f32 %v1395_v21 }
 0x502   : > { %2445 = vrcp.f32 %v1398_v22 }
 0x504   : > { %v2432_v25 = vpop.eup %2431 }
 0x506   : > { %v2434_v29 = vpop.eup %2433 }
 0x507   : > { %v2436_v33 = vpop.eup %2435 }
 0x508   : > { %v2438_v37 = vpop.eup %2437 }
 0x509   : > { %v2440_v41 = vpop.eup %2439 }
 0x50a   : > { %v2442_v49 = vpop.eup %2441 }
 0x50b   : > { %v2444_v51 = vpop.eup %2443 }
 0x50c   : > { %v2446_v55 = vpop.eup %2445 }
 0x526   : > { %v1054_v26 = vpop.f32.mrb[4].mxu0 }
 0x527   : > { %v1061_v27 = vmul.f32 %v2432_v25, %v1054_v26  ;;  %v2238_v28 = vpop.f32.mrb[5].mxu0  ;;  %v2405_v26 = vld [vmem:[%s2799_s22] sm:$0xff]  }
 0x528   : > { %v1057_v30 = vpop.f32.mrb[6].mxu0  ;;  %2285 = vmatpush3.bf16.msra.mxu0 %v2405_v26 }
 0x529   : > { %1063 = vst.msk [vmem:[#allocation3] sm:$0xff] %vm944_vm3, %v1061_v27  ;;  %v1062_v31 = vmul.f32 %v2434_v29, %v1057_v30  ;;  %v2239_v32 = vpop.f32.mrb[7].mxu0  ;;  %v2406_v27 = vld [vmem:[%s2799_s22 + $0x8] sm:$0xff]   ;;  %2286 = vmatprep.subr.bf16.mxu0 %v2561_v17  ;;  %s3159_s22 = scalar_lea.vmem %s3158_s17, %s2751_s25 }
 0x52b   : > { %1064 = vst.msk [vmem:[#allocation3 + $0x8] sm:$0xff] %vm944_vm3, %v1062_v31 }
 0x52c   : > { %2287 = vmatpush3.bf16.msra.mxu0 %v2406_v27  ;;  %v2455_v27 = vld [vmem:[%s3164_s29] sm:$0xff] (!%p2172_p1)  }
 0x534   : > { %v1178_v34 = vpop.f32.mrb[8].mxu0 }
 0x535   : > { %v1185_v35 = vmul.f32 %v2436_v33, %v1178_v34  ;;  %v2250_v36 = vpop.f32.mrb[9].mxu0 }
 0x536   : > { %v1181_v38 = vpop.f32.mrb[10].mxu0  ;;  %v2160_v36 = vld [vmem:[%s3159_s22] ss:$0 sm:$0xff] }
 0x537   : > { %v1186_v39 = vmul.f32 %v2438_v37, %v1181_v38  ;;  %1189 = vrot.lane.b32.xlu1 %v1185_v35, %s2574_s14  ;;  %v2251_v40 = vpop.f32.mrb[11].mxu0 }
 0x538   : > { %v2161_v40 = vld [vmem:[%s3160_s11] ss:$0 sm:$0xff] }
 0x539   : > { %1191 = vrot.lane.b32.xlu0 %v1186_v39, %s2574_s14  ;;  %s3165_s14 = smov (!%p2172_p1), %s3164_s29 }
 0x53c   : > { %v1310_v42 = vpop.f32.mrb[12].mxu0 }
 0x53d   : > { %v1317_v44 = vmul.f32 %v2440_v41, %v1310_v42  ;;  %v2262_v46 = vpop.f32.mrb[13].mxu0 }
 0x53e   : > { %v1313_v45 = vpop.f32.mrb[14].mxu0  ;;  %v2407_v46 = vld [vmem:[%s2813_s8] sm:$0xff]  }
 0x53f   : > { %1321 = vrot.lane.b32.xlu1 %v1317_v44, %s2575_s2  ;;  %v2263_v48 = vpop.f32.mrb[15].mxu0  ;;  %v1318_v50 = vmul.f32 %v2442_v49, %v1313_v45  ;;  %v2408_v45 = vld [vmem:[%s2813_s8 + $0x8] sm:$0xff]   ;;  %v2162_v49 = vld [vmem:[%s790_s4] ss:$0 sm:$0xff] }
 0x540   : > { %v2410_v48 = vld [vmem:[%s2813_s8 + $0x18] sm:$0xff]  }
 0x543   : > { %1323 = vrot.lane.b32.xlu1 %v1318_v50, %s2575_s2 }
 0x544   : > { %v1442_v52 = vpop.f32.mrb[16].mxu0 }
 0x545   : > { %v1449_v53 = vmul.f32 %v2444_v51, %v1442_v52  ;;  %v2274_v54 = vpop.f32.mrb[17].mxu0 }
 0x546   : > { %v1445_v56 = vpop.f32.mrb[18].mxu0 }
 0x547   : > { %v1450_v57 = vmul.f32 %v2446_v55, %v1445_v56  ;;  %1453 = vrot.lane.b32.xlu1 %v1449_v53, %s2576_s0  ;;  %v2275_v58 = vpop.f32.mrb[19].mxu0 }
 0x549   : > { %1455 = vrot.lane.b32.xlu0 %v1450_v57, %s2576_s0 }
 0x5a9   : > { %v1190_v59 = vpop.permute.xlu1 %1189 }
 0x5aa   : > { %1196 = vst.msk [vmem:[#allocation3] sm:$0xff] %vm1195_vm5, %v1190_v59 }
 0x5ab   : > { %v1192_v60 = vpop.permute.xlu0 %1191 }
 0x5ac   : > { %1197 = vst.msk [vmem:[#allocation3 + $0x8] sm:$0xff] %vm1195_vm5, %v1192_v60 }
 0x5b1   : > { %v1322_v61 = vpop.permute.xlu1 %1321 }
 0x5b2   : > { %1328 = vst.msk [vmem:[#allocation3] sm:$0xff] %vm1327_vm6, %v1322_v61 }
 0x5b5   : > { %v1324_v62 = vpop.permute.xlu1 %1323 }
 0x5b6   : > { %1329 = vst.msk [vmem:[#allocation3 + $0x8] sm:$0xff] %vm1327_vm6, %v1324_v62 }
 0x5b9   : > { %v1454_v63 = vpop.permute.xlu1 %1453 }
 0x5ba   : > { %1460 = vst.msk [vmem:[#allocation3] sm:$0xff] %vm1459_vm7, %v1454_v63 }
 0x5bb   : > { %v1456_v0 = vpop.permute.xlu0 %1455 }
 0x5bc   : > { %1461 = vst.msk [vmem:[#allocation3 + $0x8] sm:$0xff] %vm1459_vm7, %v1456_v0 }
 0x5c1   : > { %v1462_v1 = vld [vmem:[#allocation3] sm:$0xff] }
 0x5c3   : > { %v1463_v4 = vld [vmem:[#allocation3 + $0x8] sm:$0xff] }
 0x5c4   : > { %v1464_v5 = vpack.c.bf16 %v1463_v4, %v1462_v1 }
 0x5c6   : > { %2281 = vmatmul.mubr.msk.bf16.vlgmr.msra.gmra.mrb[16].mxu1 %vm819_vm1, %v1464_v5 }
 0x5c7   : > { %2300 = vmatprep.mubr.msk.bf16.mxu1 %vm2562_vm2, %v2561_v17  ;;  %2293 = vmatpush3.bf16.msra.mxu1 %v2407_v46 }
 0x5c8   : > { %2294 = vmatprep.subr.bf16.mxu1 %v2561_v17 }
 0x5cb   : > { %2295 = vmatpush3.bf16.msra.mxu1 %v2408_v45 }
 0x5cc   : > { %2296 = vmatprep.subr.bf16.mxu1 %v2561_v17 }
 0x5cf   : > { %2297 = vmatpush3.bf16.msra.mxu1 %v2409_v47 }
 0x5d0   : > { %2298 = vmatprep.subr.bf16.mxu1 %v2561_v17 }
 0x5d3   : > { %2299 = vmatpush3.bf16.msra.mxu1 %v2410_v48 }
 0x699   : > { %v1525_v7 = vpop.f32.mrb[16].mxu1 }
 0x69a   : > { %v1526_v8 = vadd.f32 %v2156_v6, %v1525_v7  ;;  %v2282_v9 = vpop.f32.mrb[17].mxu1 }
 0x69b   : > { %v1528_v10 = vpop.f32.mrb[18].mxu1 }
 0x69c   : > { %v2947_v11 = vadd.f32 %v1526_v8, %v2825_v2  ;;  %v1529_v12 = vadd.f32 %v2156_v6, %v1528_v10  ;;  %v2283_v13 = vpop.f32.mrb[19].mxu1 }
 0x69d   : > { %v2166_v13 = vld [vmem:[%s798_s7] ss:$0 sm:$0xff] }
 0x69e   : > { %v2950_v14 = vadd.f32 %v1529_v12, %v2827_v3  ;;  %v1536_v15 = vsel %vm819_vm1, %v2947_v11, 0.0 }
 0x69f   : > { %1537 = vadd.xlane.f32.xlu1 %v1536_v15 }
 0x6a0   : > { %v1539_v16 = vsel %vm819_vm1, %v2950_v14, 0.0 }
 0x6a1   : > { %1540 = vadd.xlane.f32.xlu0 %v1539_v16 }
 0x72c   : > { %v1538_v18 = vpop.xlane.xlu1 %1537 }
 0x72d   : > { %v1542_v19 = vmul.f32 0.03125, %v1538_v18 }
 0x72e   : > { %v1541_v20 = vpop.xlane.xlu0 %1540 }
 0x72f   : > { %v1544_v2 = vsub.f32 %v2947_v11, %v1542_v19  ;;  %v1543_v21 = vmul.f32 0.03125, %v1541_v20 }
 0x731   : > { %v1545_v22 = vsub.f32 %v2950_v14, %v1543_v21  ;;  %v1546_v3 = vmul.f32 %v1544_v2, %v1544_v2 }
 0x733   : > { %v1548_v23 = vsel %vm819_vm1, %v1546_v3, 0.0  ;;  %v1547_v24 = vmul.f32 %v1545_v22, %v1545_v22 }
 0x734   : > { %1549 = vadd.xlane.f32.xlu0 %v1548_v23 }
 0x735   : > { %v1551_v25 = vsel %vm819_vm1, %v1547_v24, 0.0 }
 0x738   : > { %1552 = vadd.xlane.f32.xlu0 %v1551_v25 }
 0x7c1   : > { %v1550_v28 = vpop.xlane.xlu0 %1549 }
 0x7c2   : > { %v1554_v29 = vmul.f32 0.03125, %v1550_v28  ;;  %v2456_v28 = vld [vmem:[%s3165_s14 + $0x8] sm:$0xff] (!%p2172_p1)  }
 0x7c4   : > { %v1556_v30 = vadd.f32 1e-06, %v1554_v29 }
 0x7c5   : > { %v1553_v31 = vpop.xlane.xlu0 %1552 }
 0x7c6   : > { %2447 = vrsqrt.f32 %v1556_v30  ;;  %v1555_v32 = vmul.f32 0.03125, %v1553_v31 }
 0x7c8   : > { %v1557_v33 = vadd.f32 1e-06, %v1555_v32 }
 0x7ca   : > { %2449 = vrsqrt.f32 %v1557_v33  ;;  %v2173_v33 = vld [vmem:[%s3166_s16] ss:$0 sm:$0xff] (!%p2172_p1) }
 0x7d0   : > { %v2448_v34 = vpop.eup %2447 }
 0x7d1   : > { %v1560_v35 = vmul.f32 %v2448_v34, %v1544_v2 }
 0x7d3   : > { %v1568_v38 = vmul.f32 %v2160_v36, %v1560_v35  ;;  %v2174_v35 = vld [vmem:[%s3167_s13] ss:$0 sm:$0xff] (!%p2172_p1) }
 0x7d4   : > { %v2450_v37 = vpop.eup %2449 }
 0x7d5   : > { %v1561_v39 = vmul.f32 %v2450_v37, %v1545_v22  ;;  %v1576_v42 = vadd.f32 %v2161_v40, %v1568_v38 }
 0x7d7   : > { %v1569_v41 = vmul.f32 %v2160_v36, %v1561_v39  ;;  %v1863_v39 = vlaneseq (!%p2172_p1) }
 0x7d9   : > { %v1577_v43 = vadd.f32 %v2161_v40, %v1569_v41  ;;  %v1864_v40 = vand.u32 (!%p2172_p1), 127, %v1863_v39 }
 0x7db   : > { %v1578_v44 = vpack.c.bf16 %v1577_v43, %v1576_v42  ;;  %vm1865_vm10 = vcmp.eq.s32.totalorder (!%p2172_p1), %v1864_v40, 0 }
 0x7dd   : > { %2289 = vmatmul.mubr.msk.bf16.vlgmr.msra.gmra.mrb[20].mxu0 %vm819_vm1, %v1578_v44 }
 0x8b0   : > { %v1639_v50 = vpop.f32.mrb[20].mxu0 }
 0x8b1   : > { %v1640_v51 = vadd.f32 %v2162_v49, %v1639_v50  ;;  %v2290_v52 = vpop.f32.mrb[21].mxu0 }
 0x8b2   : > { %v1642_v53 = vpop.f32.mrb[22].mxu0 }
 0x8b3   : > { %v1648_v54 = vmul.f32 %v1640_v51, %v1640_v51  ;;  %v1643_v55 = vadd.f32 %v2162_v49, %v1642_v53  ;;  %v2291_v56 = vpop.f32.mrb[23].mxu0  ;;  %v1646_v6 = vmul.f32 0.5, %v1640_v51 }
 0x8b5   : > { %v1650_v57 = vmul.f32 %v1648_v54, %v1640_v51  ;;  %v1649_v58 = vmul.f32 %v1643_v55, %v1643_v55  ;;  %v1647_v7 = vmul.f32 0.5, %v1643_v55 }
 0x8b7   : > { %v1652_v59 = vmul.f32 0.044715, %v1650_v57  ;;  %v1651_v60 = vmul.f32 %v1649_v58, %v1643_v55 }
 0x8b9   : > { %v1654_v61 = vadd.f32 %v1652_v59, %v1640_v51  ;;  %v1653_v17 = vmul.f32 0.044715, %v1651_v60 }
 0x8bb   : > { %v1656_v62 = vmul.f32 0.7978846, %v1654_v61  ;;  %v1655_v63 = vadd.f32 %v1653_v17, %v1643_v55 }
 0x8bd   : > { %2451 = vtanh.f32 %v1656_v62  ;;  %v1657_v0 = vmul.f32 0.7978846, %v1655_v63 }
 0x8bf   : > { %2453 = vtanh.f32 %v1657_v0 }
 0x8c7   : > { %v2452_v1 = vpop.eup %2451 }
 0x8c8   : > { %v1660_v4 = vadd.f32 1.0, %v2452_v1 }
 0x8c9   : > { %v2454_v5 = vpop.eup %2453 }
 0x8ca   : > { %v1661_v8 = vadd.f32 1.0, %v2454_v5  ;;  %v1662_v9 = vmul.f32 %v1660_v4, %v1646_v6 }
 0x8cc   : > { %v1663_v10 = vmul.f32 %v1661_v8, %v1647_v7 }
 0x8ce   : > { %v1664_v12 = vpack.c.bf16 %v1663_v10, %v1662_v9 }
 0x8d0   : > { %2301 = vmatmul.mubr.msk.bf16.vlgmr.msra.gmra.mrb[20].mxu1 %vm1704_vm8, %v1664_v12 }
 0x9a3   : > { %v1742_v15 = vpop.f32.mrb[20].mxu1 }
 0x9a4   : > { %v1743_v16 = vadd.f32 %v2166_v13, %v1742_v15  ;;  %v2302_v18 = vpop.f32.mrb[21].mxu1  ;;  %1756 = sbr.rel (%p2172_p1) target bundleno = 3319 (0xcf7), region = 96 }
 0x9a5   : > { %v1745_v19 = vpop.f32.mrb[22].mxu1 }
 0x9a6   : > { %v1749_v20 = vadd.f32 %v1743_v16, %v2947_v11  ;;  %v1746_v2 = vadd.f32 %v2166_v13, %v1745_v19  ;;  %v2303_v21 = vpop.f32.mrb[23].mxu1 }
 0x9a8   : > { %1751 = vst.msk [vmem:[#allocation2] sm:$0xff] %vm819_vm1, %v1749_v20  ;;  %v1750_v22 = vadd.f32 %v1746_v2, %v2950_v14  ;;  %v1759_v3 = vsel (!%p2172_p1), %vm819_vm1, %v1749_v20, 0.0  ;;  %v2577_v14 = vmov (!%p2172_p1), 0.0  }
 0x9a9   : > { %1760 = vadd.xlane.f32.xlu0 (!%p2172_p1), %v1759_v3  ;;  %2304 = vmatprep.subr.bf16.mxu0 (!%p2172_p1), %v2577_v14 }
 0x9aa   : > { %1752 = vst.msk [vmem:[#allocation2 + $0x8] sm:$0xff] %vm819_vm1, %v1750_v22  ;;  %2308 = vmatprep.mubr.msk.bf16.mxu0 (!%p2172_p1), %vm2578_vm9, %v2577_v14  ;;  %2305 = vmatpush3.bf16.msra.mxu0 (!%p2172_p1), %v2455_v27  ;;  %v1762_v47 = vsel (!%p2172_p1), %vm819_vm1, %v1750_v22, 0.0 }
 0x9ab   : > { %2306 = vmatprep.subr.bf16.mxu0 %v2577_v14 }
 0x9ae   : > { %2307 = vmatpush3.bf16.msra.mxu0 %v2456_v28 }
 0xa36   : > { %v1761_v23 = vpop.xlane.xlu0 %1760 }
 0xa37   : > { %v1765_v24 = vmul.f32 0.03125, %v1761_v23 }
 0xa39   : > { %v1767_v25 = vsub.f32 %v1749_v20, %v1765_v24 }
 0xa3b   : > { %v1769_v26 = vmul.f32 %v1767_v25, %v1767_v25 }
 0xa3d   : > { %v1771_v11 = vsel %vm819_vm1, %v1769_v26, 0.0 }
 0xa3e   : > { %1772 = vadd.xlane.f32.xlu0 %v1771_v11 }
 0xacb   : > { %v1773_v29 = vpop.xlane.xlu0 %1772 }
 0xacc   : > { %v1777_v30 = vmul.f32 0.03125, %v1773_v29 }
 0xace   : > { %v1779_v31 = vadd.f32 1e-06, %v1777_v30 }
 0xad0   : > { %2457 = vrsqrt.f32 %v1779_v31 }
 0xada   : > { %v2458_v32 = vpop.eup %2457 }
 0xadb   : > { %v1783_v34 = vmul.f32 %v2458_v32, %v1767_v25 }
 0xadd   : > { %v1791_v36 = vmul.f32 %v2173_v33, %v1783_v34 }
 0xadf   : > { %v1799_v37 = vadd.f32 %v2174_v35, %v1791_v36 }
 0xae1   : > { %1801 = vst.msk [vmem:[%s2818_s15] sm:$0xff] %vm819_vm1, %v1799_v37  ;;  %v1803_v38 = vpack.c.bf16 %v1799_v37, %v1799_v37 }
 0xae3   : > { %2309 = vmatmul.mubr.msk.bf16.vlgmr.msra.gmra.mrb[0].mxu0 %vm819_vm1, %v1803_v38 }
 0xbb6   : > { %v1857_v41 = vpop.f32.mrb[0].mxu0 }
 0xbb7   : > { %v1866_v42 = vsel %vm1865_vm10, -inf, %v1857_v41  ;;  %v2310_v43 = vpop.f32.mrb[1].mxu0 }
 0xbb8   : > { %v1860_v44 = vpop.f32.mrb[2].mxu0  ;;  %v1868_v46 = vsel %vm1867_vm11, %v1866_v42, -inf }
 0xbb9   : > { %1869 = vmax.xlane.f32.xlu1 %v1868_v46  ;;  %v2311_v45 = vpop.f32.mrb[3].mxu0 }
 0xbbd   : > { %1763 = vadd.xlane.f32.xlu1 %v1762_v47 }
 0xc46   : > { %v1870_v48 = vpop.xlane.xlu1 %1869 }
 0xc47   : > { %v1871_v49 = vsub.f32 %v1866_v42, %v1870_v48 }
 0xc49   : > { %v1872_v50 = vmul.f32 1.442695, %v1871_v49 }
 0xc4a   : > { %v1764_v51 = vpop.xlane.xlu1 %1763 }
 0xc4b   : > { %2459 = vpow2.f32 %v1872_v50  ;;  %v1766_v52 = vmul.f32 0.03125, %v1764_v51 }
 0xc4d   : > { %v1768_v53 = vsub.f32 %v1750_v22, %v1766_v52 }
 0xc4f   : > { %v1770_v54 = vmul.f32 %v1768_v53, %v1768_v53 }
 0xc51   : > { %v1774_v55 = vsel %vm819_vm1, %v1770_v54, 0.0 }
 0xc52   : > { %1775 = vadd.xlane.f32.xlu0 %v1774_v55 }
 0xc55   : > { %v2460_v56 = vpop.eup %2459 }
 0xc56   : > { %v1874_v57 = vsel %vm1867_vm11, %v2460_v56, 0.0 }
 0xc57   : > { %1875 = vadd.xlane.f32.xlu1 %v1874_v57 }
 0xcdf   : > { %v1776_v58 = vpop.xlane.xlu0 %1775 }
 0xce0   : > { %v1778_v59 = vmul.f32 0.03125, %v1776_v58 }
 0xce2   : > { %v1780_v60 = vadd.f32 1e-06, %v1778_v59 }
 0xce4   : > { %2461 = vrsqrt.f32 %v1780_v60  ;;  %v1876_v61 = vpop.xlane.xlu1 %1875 }
 0xce5   : > { %2463 = vlog2.f32 %v1876_v61 }
 0xcee   : > { %v2462_v17 = vpop.eup %2461 }
 0xcef   : > { %v2464_v62 = vpop.eup %2463  ;;  %v1784_v63 = vmul.f32 %v2462_v17, %v1768_v53 }
 0xcf0   : > { %v1878_v0 = vmul.f32 0.6931472, %v2464_v62 }
 0xcf1   : > { %v1792_v1 = vmul.f32 %v2173_v33, %v1784_v63 }
 0xcf2   : > { %v1879_v4 = vadd.f32 %v1878_v0, %v1870_v48 }
 0xcf3   : > { %v1800_v5 = vadd.f32 %v2174_v35, %v1792_v1 }
 0xcf4   : > { %v1880_v6 = vsub.f32 %v1866_v42, %v1879_v4 }
 0xcf5   : > { %1802 = vst.msk [vmem:[%s2818_s15 + $0x8] sm:$0xff] %vm819_vm1, %v1800_v5 }
 0xcf6   : > { %1881 = vst.msk [vmem:[%s2822_s23] sm:$0x1] %vm1867_vm11, %v1880_v6 }
 0xcf7 PF: > { %s3168_s17 = sld [smem:[#allocation10_spill]]  ;;  %s3170_s30 = sld [smem:[#allocation33_spill]] }
 0xcf8   : > { %s1903_s20 = sshll.u32 %s2822_s23, 4  ;;  %s3172_s8 = sand.u32 1, %s2535_s28   ;;  %s1904_s20 = int_to_ptr.vmem [resolvable:$true] %s1903_s20 }
 0xcf9   : > { %s1888_s19 = scalar_lea.sflag [#allocation5], %s3172_s8  ;;  %s2465_s26 = scalar_lea.vmem %s1904_s20, 16 }
 0xcfa   : > { %p2466_p2 = scmp.ne.s32.totalorder %s1904_s20, %s2465_s26  ;;  %s2579_s15 = smov [#allocation4]  }
 0xcfb   : > { %s2469_s7 = sshll.u32 %s2579_s15, 4  ;;  %s2470_s7 = int_to_ptr.vmem [resolvable:$false] %s2469_s7 }
 0xcfc   : > { %p2467_p4 = pnand %p2466_p2, %p2724_p3  ;;  %s2471_s25 = scalar_lea.vmem %s2470_s7, 32 }
 0xcfd   : > { %s2178_s27 = sshll.u32 %s3168_s17, 4  ;;  %s3171_s4 = smov %s3170_s30 }
 0xcfe   : > { %s3025_s1 = scalar_lea.hbm %s3170_s30, %s2178_s27  ;;  %p2468_p5 = pneg %p2467_p4 }
 0xcff   : > { %p2472_p6 = scmp.lt.s32.totalorder %s1904_s20, %s2470_s7  ;;  %p2473_p7 = scmp.lt.s32.totalorder %s2471_s25, %s2465_s26 }
 0xd01   : > { %p2474_p8 = por %p2473_p7, %p2472_p6 }
 0xd03   : > { %p2475_p10 = pnand %p2474_p8, %p2468_p5 }
 0xd05   : > { %2478 = shalt.err (!%p2475_p10)
}
 0xd06   : > { %s2479_s23 = scalar_lea.hbm %s3025_s1, 16  ;;  %s2483_s0 = scalar_lea.hbm %s3171_s4, 32 }
 0xd07   : > { %p2480_p11 = scmp.ne.s32.totalorder %s3025_s1, %s2479_s23  ;;  %p2484_p0 = scmp.lt.u32.totalorder %s3025_s1, %s3171_s4 }
 0xd08   : > { %p2485_p1 = scmp.lt.u32.totalorder %s2483_s0, %s2479_s23  ;;  %p2487_p4 = scmp.lt.u32.totalorder %s2479_s23, %s3025_s1 }
 0xd09   : > { %p2481_p12 = pnand %p2480_p11, %p2724_p3 }
 0xd0a   : > { %p2486_p2 = por %p2485_p1, %p2484_p0 }
 0xd0b   : > { %p2482_p13 = pneg %p2481_p12 }
 0xd0c   : > { %p2488_p5 = por %p2487_p4, %p2486_p2 }
 0xd0e   : > { %p2489_p6 = pnand %p2488_p5, %p2482_p13 }
 0xd10   : > { %2492 = shalt.err (!%p2489_p6)
}
 0xd11   : > { %2312 = dma.vmem_to_hbm [thread:$0]  (%p2724_p3), %s1904_s20, 16, %s3025_s1, %s1888_s19  }
 0xd12 PF: > { %s3173_s16 = sld [smem:[#allocation13_spill]]  ;;  %s3174_s21 = sld [smem:[#allocation7_spill]] }
 0xd18   : > { %p2318_p7 = scmp.ge.s32.totalorder %s3173_s16, 2  ;;  %s1923_s13 = sand.u32 1, %s3174_s21  }
 0xd19   : > { %s1924_s17 = scalar_lea.sflag [#allocation5], %s1923_s13 }
 0xd1a   : > { %p2315_p8 = pnand %p2318_p7, %p2734_p9 }
 0xd1c   : > { %2526 = dma.done.wait (!%p2315_p8), %s1924_s17, 16  }
 0xd1d   : > { %2528 = vsyncadd (!%p2315_p8), %s1924_s17, 4294967280  ;;  %s32_s20 = sadd.s32 1, %s3173_s16   ;;  %s3176_s6 = sld [smem:[#allocation8_spill]] }
 0xd1e   : > { %p29_p10 = scmp.ge.s32.totalorder %s32_s20, 6   ;;  %s3177_s29 = sld [smem:[#allocation18_spill]] }
 0xd1f   : > { %s3178_s30 = sld [smem:[#allocation11_spill]]  ;;  %s3179_s0 = sld [smem:[#allocation12_spill]] }
 0xd20   : > { %s3180_s19 = sld [smem:[#allocation14_spill]]  ;;  %s3181_s1 = sld [smem:[#allocation16_spill]] }
 0xd21   : > { %s3182_s27 = smov %s2535_s28  ;;  %31 = sbr.rel (!%p29_p10) target bundleno = 21 (0x15), region = 182 }
 0xd23   : > { %s3183_s28 = smov %s3176_s6 }
 0xd28   :  { %1928 = vsyncpa [#allocation5], 1 }
 0xd29   :  { %1930 = vsyncpa [#allocation5 + $0x1], 1 }

</bundles_post_ra>
